<compile_context>
chip_gen: v6e
topology: v6e:2x2x1
jax: 0.10.0
libtpu: 0.0.40
codegen_flags: <defaults>
</compile_context>

<pallas_src>
import jax
import jax.numpy as jnp
from jax import lax
from jax.experimental import pallas as pl
from jax.experimental.pallas import tpu as pltpu

NEG = -1e9        # effective -inf for padded tag columns (exp underflows to 0 in f32)
OUT_LANES = 128   # lane-dense loss-output width


# ----------------------------------------------------------------------------
# Fused kernel: (x @ W + b) -> log_softmax -> CRF NLL, one batch tile.
#   x_ref    : [S, tb, E]   bf16 time-major embeddings
#   tags_ref : [S, tb, 1]   int32 gold tags
#   len_ref  : [tb, 1]      int32 sequence lengths
#   w_ref    : [E, Tp]      bf16 tag-padded projection weight
#   b_ref    : [1, Tp]      f32 bias (pad cols = NEG)
#   trans_ref: [Tp, Tp]     f32 transitions, trans[i,j] = score(i->j), pads 0
#   start/end: [1, Tp]      f32 start/end scores (pads 0)
#   loss_ref : [tb, 128]    f32 per-sequence NLL broadcast across lanes
#   emis_ref : VMEM scratch [S, tb, Tp] f32 log-softmax emissions
# ----------------------------------------------------------------------------
def _bert_crf_kernel(x_ref, tags_ref, len_ref, w_ref, b_ref, trans_ref,
                     start_ref, end_ref, loss_ref, emis_ref):
    s, tb, e = x_ref.shape
    tp = w_ref.shape[1]
    f32 = jnp.float32

    # ---- fused Linear + log_softmax (one big lane-dense MXU matmul) --------
    # Upcast before the major-dim collapse so the reshape stays in the f32
    # (8,128)-tile layout (pure reindex); the MXU still sees bf16 operands.
    x2 = x_ref[...].astype(f32).reshape(s * tb, e)
    z = jnp.dot(x2.astype(jnp.bfloat16), w_ref[...],
                preferred_element_type=f32) + b_ref[...]
    zmax = jnp.max(z, axis=-1, keepdims=True)
    lse = jnp.log(jnp.sum(jnp.exp(z - zmax), axis=-1, keepdims=True)) + zmax
    logp = (z - lse).reshape(s, tb, tp)                     # [S, tb, Tp] f32
    emis_ref[...] = logp

    tags = tags_ref[...]                                    # [S, tb, 1] int32
    lengths = len_ref[...]                                  # [tb, 1]    int32
    start = start_ref[...]                                  # [1, Tp]
    end = end_ref[...]                                      # [1, Tp]

    # ---- gold path score ----------------------------------------------------
    iota_s = lax.broadcasted_iota(jnp.int32, (s, tb, 1), 0)
    iota_t3 = lax.broadcasted_iota(jnp.int32, (1, 1, tp), 2)   # broadcast in compare
    iota_t2 = lax.broadcasted_iota(jnp.int32, (1, tp), 1)

    valid = iota_s < lengths[None]                           # [S, tb, 1] bool
    # one-hot of gold tags, zeroed at padded timesteps (masks emit & trans terms)
    onehot = jnp.logical_and(tags == iota_t3, valid).astype(f32)   # [S, tb, Tp]

    gold_emit = jnp.sum(jnp.sum(logp * onehot, axis=2, keepdims=True), axis=0)   # [tb,1]

    # rows[k, b, :] = trans[tags[k, b], :]   (bf16 MXU contraction over Tp)
    rows = jnp.dot(onehot.reshape(s * tb, tp).astype(jnp.bfloat16),
                   trans_ref[...].astype(jnp.bfloat16),
                   preferred_element_type=f32).reshape(s, tb, tp)
    gold_trans = jnp.sum(
        jnp.sum(rows[:-1] * onehot[1:], axis=2, keepdims=True), axis=0)          # [tb,1]

    start_g = jnp.sum(onehot[0] * start, axis=1, keepdims=True)                  # [tb,1]

    # end score via gathered last tag (no [S,tb,Tp] last_sel*onehot product)
    last_sel = (iota_s == (lengths - 1)[None]).astype(f32)                       # [S,tb,1]
    last_tag = jnp.sum(last_sel * tags.astype(f32), axis=0).astype(jnp.int32)    # [tb,1]
    last_oh = (last_tag == iota_t2).astype(f32)                                  # [tb,Tp]
    end_g = jnp.sum(last_oh * end, axis=1, keepdims=True)                        # [tb,1]

    gold = gold_emit + gold_trans + start_g + end_g                              # [tb,1]

    # ---- normalizer: exp-space forward algorithm (one MXU matmul per step) --
    colmax = jnp.max(trans_ref[...], axis=0, keepdims=True)       # [1, Tp]
    exp_trans = jnp.exp(trans_ref[...] - colmax)                  # [Tp, Tp] f32, hoisted

    alpha0 = logp[0] + start                                      # [tb, Tp]

    def body(step, alpha):
        emit_t = emis_ref[step]                                   # [tb, Tp]
        rowmax = jnp.max(alpha, axis=1, keepdims=True)            # [tb, 1]
        ealpha = jnp.exp(alpha - rowmax)                          # [tb, Tp]
        ssum = jnp.dot(ealpha, exp_trans, preferred_element_type=f32)
        new = jnp.log(ssum) + rowmax + colmax + emit_t
        return jnp.where(step < lengths, new, alpha)

    alpha = lax.fori_loop(1, s, body, alpha0)
    alpha = alpha + end
    amax = jnp.max(alpha, axis=1, keepdims=True)
    all_path = jnp.log(jnp.sum(jnp.exp(alpha - amax), axis=1, keepdims=True)) + amax

    # lane-dense store (full-vreg writes); wrapper reads column 0
    loss_ref[...] = jnp.broadcast_to(all_path - gold, loss_ref.shape)


def _bert_crf_pallas(x_sbe, tags_sb1, lengths_b1, w_p, b_p, trans_p,
                     start_p, end_p, *, tb):
    s, bp, e = x_sbe.shape
    tp = w_p.shape[1]
    grid = (bp // tb,)
    return pl.pallas_call(
        _bert_crf_kernel,
        out_shape=jax.ShapeDtypeStruct((bp, OUT_LANES), jnp.float32),
        grid=grid,
        in_specs=[
            pl.BlockSpec((s, tb, e), lambda i: (0, i, 0)),    # x (bf16)
            pl.BlockSpec((s, tb, 1), lambda i: (0, i, 0)),    # gold tags
            pl.BlockSpec((tb, 1), lambda i: (i, 0)),          # lengths
            # Grid-invariant params: constant index_map => fetched once, never
            # re-DMA'd across grid steps.
            pl.BlockSpec((e, tp), lambda i: (0, 0)),          # W (bf16)
            pl.BlockSpec((1, tp), lambda i: (0, 0)),          # b (f32, NEG pads)
            pl.BlockSpec((tp, tp), lambda i: (0, 0)),         # trans
            pl.BlockSpec((1, tp), lambda i: (0, 0)),          # start
            pl.BlockSpec((1, tp), lambda i: (0, 0)),          # end
        ],
        out_specs=pl.BlockSpec((tb, OUT_LANES), lambda i: (i, 0)),
        scratch_shapes=[pltpu.VMEM((s, tb, tp), jnp.float32)],
        compiler_params=pltpu.CompilerParams(
            dimension_semantics=("parallel",),
            vmem_limit_bytes=64 * 1024 * 1024),
    )(x_sbe, tags_sb1, lengths_b1, w_p, b_p, trans_p, start_p, end_p)


# ----------------------------------------------------------------------------
# BertCRF forward (loss branch): {'loss': per-sequence CRF NLL, shape [B]}
# ----------------------------------------------------------------------------
def bert_crf_forward(words, target, emb_table, w, b, trans, start, end, *, tb=None):
    bsz, slen = words.shape
    e = emb_table.shape[1]
    t = w.shape[1]
    tp = ((t + 127) // 128) * 128            # lane-dense (padded) tag dimension

    if tb is None:
        # Production: tb=128 (v5e/v7x) or 256 (v6e) to fill MXU rows on the
        # per-step recursion matmul, bounded by VMEM
        #   ~ 2*S*tb*E*2 (bf16 x, double-buffered) + S*tb*Tp*4 (emis scratch).
        # Demo batch is tiny, so just round up to one sublane tile.
        tb = 128 if bsz >= 128 else max(8, ((bsz + 7) // 8) * 8)
    bp = ((bsz + tb - 1) // tb) * tb

    # --- tag-axis padding (pad cols: emission ~ NEG, transition/start/end 0) --
    w_p = jnp.zeros((e, tp), jnp.float32).at[:, :t].set(w).astype(jnp.bfloat16)
    b_p = jnp.full((1, tp), NEG, jnp.float32).at[0, :t].set(b)
    trans_p = jnp.zeros((tp, tp), jnp.float32).at[:t, :t].set(trans)
    start_p = jnp.zeros((1, tp), jnp.float32).at[0, :t].set(start)
    end_p = jnp.zeros((1, tp), jnp.float32).at[0, :t].set(end)

    # --- batch padding; padded rows have length 0 and are sliced off ---------
    words_p = jnp.zeros((bp, slen), jnp.int32).at[:bsz].set(words.astype(jnp.int32))
    target_p = jnp.zeros((bp, slen), jnp.int32).at[:bsz].set(target.astype(jnp.int32))

    lengths = jnp.sum((words_p != 0).astype(jnp.int32), axis=1).reshape(bp, 1)

    # Time-major embedding gather -> [S, Bp, E] directly (no HBM transpose of
    # an activation-sized tensor); streamed to the kernel in bf16.
    x_sbe = emb_table[words_p.T].astype(jnp.bfloat16)
    tags_sb1 = target_p.T[:, :, None]                           # [S, Bp, 1]

    loss = _bert_crf_pallas(x_sbe, tags_sb1, lengths, w_p, b_p, trans_p,
                            start_p, end_p, tb=tb)
    return {"loss": loss[:bsz, 0]}   # sum over the 1-task list == this [B] tensor


# ----------------------------------------------------------------------------
# Pure-JAX f32 reference (same semantics as fastNLP CRF forward).
# ----------------------------------------------------------------------------
def reference_loss(words, target, emb_table, w, b, trans, start, end):
    mask_bs = (words != 0).astype(jnp.float32)
    x = emb_table[words]
    z = x @ w + b
    logp = jax.nn.log_softmax(z, axis=-1)
    logits = jnp.transpose(logp, (1, 0, 2))                # [S, B, T]
    m = jnp.transpose(mask_bs, (1, 0))                     # [S, B]
    tg = jnp.transpose(target, (1, 0))                     # [S, B]
    s, bsz, t = logits.shape

    alpha = logits[0] + start

    def body(step, alpha):
        tmp = alpha[:, :, None] + trans[None, :, :] + logits[step][:, None, :]
        new = jax.nn.logsumexp(tmp, axis=1)
        return jnp.where(m[step][:, None] > 0, new, alpha)

    alpha = lax.fori_loop(1, s, body, alpha)
    all_path = jax.nn.logsumexp(alpha + end, axis=1)       # [B]

    emit_g = jnp.take_along_axis(logits, tg[:, :, None], axis=2)[:, :, 0] * m
    trans_g = trans[tg[:-1], tg[1:]] * m[1:]
    last_idx = (jnp.sum(m, axis=0) - 1).astype(jnp.int32)
    last_tag = tg[last_idx, jnp.arange(bsz)]
    gold = emit_g.sum(0) + trans_g.sum(0) + start[tg[0]] + end[last_tag]
    return all_path - gold


if __name__ == "__main__":
    B, S, V, E, T = 2, 16, 32, 32, 8

    key = jax.random.PRNGKey(0)
    k_emb, k_w, k_b, k_tr, k_st, k_en, k_words, k_tags = jax.random.split(key, 8)

    emb_table = jax.random.normal(k_emb, (V, E), jnp.float32) * 0.1
    w = jax.random.normal(k_w, (E, T), jnp.float32) * 0.1
    b = jax.random.normal(k_b, (T,), jnp.float32) * 0.1
    trans = jax.random.normal(k_tr, (T, T), jnp.float32) * 0.1
    start = jax.random.normal(k_st, (T,), jnp.float32) * 0.1
    end = jax.random.normal(k_en, (T,), jnp.float32) * 0.1

    words = jax.random.randint(k_words, (B, S), 1, V).astype(jnp.int32)
    words = words.at[0, 12:].set(0)     # padded tail, batch 0
    words = words.at[1, 14:].set(0)     # padded tail, batch 1
    target = jax.random.randint(k_tags, (B, S), 0, T).astype(jnp.int32)

    out = bert_crf_forward(words, target, emb_table, w, b, trans, start, end)
    loss = jax.block_until_ready(out["loss"])

    ref = jax.block_until_ready(
        reference_loss(words, target, emb_table, w, b, trans, start, end))

    assert loss.shape == (B,)
    # 2e-2 tolerance: x/W (and the gold-transition operands) feed the MXU in
    # bfloat16 with f32 accumulation; the f32 reference uses exact inputs.
    assert jnp.allclose(loss, ref, rtol=2e-2, atol=2e-2), (loss, ref)
    print("KERNEL_OK")
</pallas_src>

<mosaic_0001>
module attributes {stable_mosaic.version = 11 : i64} {
  func.func @_bert_crf_kernel(%arg0: i32, %arg1: memref<16x8x32xbf16, #tpu.memory_space<vmem>>, %arg2: memref<16x8x1xi32, #tpu.memory_space<vmem>>, %arg3: memref<8x1xi32, #tpu.memory_space<vmem>>, %arg4: memref<32x128xbf16, #tpu.memory_space<vmem>>, %arg5: memref<1x128xf32, #tpu.memory_space<vmem>>, %arg6: memref<128x128xf32, #tpu.memory_space<vmem>>, %arg7: memref<1x128xf32, #tpu.memory_space<vmem>>, %arg8: memref<1x128xf32, #tpu.memory_space<vmem>>, %arg9: memref<8x128xf32, #tpu.memory_space<vmem>>, %arg10: memref<16x8x128xf32, #tpu.memory_space<vmem>>) attributes {dimension_semantics = [#tpu.dimension_semantics<parallel>], iteration_bounds = array<i64: 1>, scalar_prefetch = 0 : i64, scratch_operands = 1 : i64, tpu.core_type = #tpu.core_type<tc>, window_params = [{transform_indices = @transform_0, window_bounds = array<i64: 16, 8, 32>}, {transform_indices = @transform_1, window_bounds = array<i64: 16, 8, 1>}, {transform_indices = @transform_2, window_bounds = array<i64: 8, 1>}, {pipeline_mode = #tpu.pipeline_mode<synchronous>, transform_indices = @transform_3, window_bounds = array<i64: 32, 128>}, {pipeline_mode = #tpu.pipeline_mode<synchronous>, transform_indices = @transform_4, window_bounds = array<i64: 1, 128>}, {pipeline_mode = #tpu.pipeline_mode<synchronous>, transform_indices = @transform_5, window_bounds = array<i64: 128, 128>}, {pipeline_mode = #tpu.pipeline_mode<synchronous>, transform_indices = @transform_6, window_bounds = array<i64: 1, 128>}, {pipeline_mode = #tpu.pipeline_mode<synchronous>, transform_indices = @transform_7, window_bounds = array<i64: 1, 128>}, {transform_indices = @transform_8, window_bounds = array<i64: 8, 128>}]} {
    %c0 = arith.constant 0 : index
    %c0_0 = arith.constant 0 : index
    %c0_1 = arith.constant 0 : index
    %0 = vector.load %arg1[%c0, %c0_0, %c0_1] : memref<16x8x32xbf16, #tpu.memory_space<vmem>>, vector<16x8x32xbf16>
    %1 = arith.extf %0 : vector<16x8x32xbf16> to vector<16x8x32xf32>
    %2 = vector.shape_cast %1 : vector<16x8x32xf32> to vector<128x32xf32>
    %3 = arith.truncf %2 : vector<128x32xf32> to vector<128x32xbf16>
    %c0_2 = arith.constant 0 : index
    %c0_3 = arith.constant 0 : index
    %4 = vector.load %arg4[%c0_2, %c0_3] : memref<32x128xbf16, #tpu.memory_space<vmem>>, vector<32x128xbf16>
    %cst = arith.constant dense<0.000000e+00> : vector<128x128xf32>
    %5 = tpu.matmul %3, %4, %cst {dimension_numbers = #tpu.dot_dimension_numbers<[1], [0], [0], [1], [0, 0, 1, 1], [], []>} : vector<128x32xbf16>, vector<32x128xbf16>, vector<128x128xf32> -> vector<128x128xf32>
    %c0_4 = arith.constant 0 : index
    %c0_5 = arith.constant 0 : index
    %6 = vector.load %arg5[%c0_4, %c0_5] : memref<1x128xf32, #tpu.memory_space<vmem>>, vector<1x128xf32>
    %7 = vector.broadcast %6 : vector<1x128xf32> to vector<128x128xf32>
    %8 = arith.addf %5, %7 : vector<128x128xf32>
    %cst_6 = arith.constant dense<0xFF800000> : vector<128xf32>
    %9 = vector.multi_reduction <maximumf>, %8, %cst_6 [1] : vector<128x128xf32> to vector<128xf32>
    %10 = vector.shape_cast %9 : vector<128xf32> to vector<128x1xf32>
    %11 = vector.broadcast %10 : vector<128x1xf32> to vector<128x128xf32>
    %12 = arith.subf %8, %11 : vector<128x128xf32>
    %13 = math.exp %12 : vector<128x128xf32>
    %cst_7 = arith.constant dense<0.000000e+00> : vector<128xf32>
    %14 = vector.multi_reduction <add>, %13, %cst_7 [1] : vector<128x128xf32> to vector<128xf32>
    %15 = vector.shape_cast %14 : vector<128xf32> to vector<128x1xf32>
    %16 = math.log %15 : vector<128x1xf32>
    %17 = arith.addf %16, %10 : vector<128x1xf32>
    %18 = vector.broadcast %17 : vector<128x1xf32> to vector<128x128xf32>
    %19 = arith.subf %8, %18 : vector<128x128xf32>
    %20 = vector.shape_cast %19 : vector<128x128xf32> to vector<16x8x128xf32>
    %c0_8 = arith.constant 0 : index
    %c0_9 = arith.constant 0 : index
    %c0_10 = arith.constant 0 : index
    %21 = vector.load %arg10[%c0_8, %c0_9, %c0_10] : memref<16x8x128xf32, #tpu.memory_space<vmem>>, vector<16x8x128xf32>
    tpu.vector_store %arg10[%c0_8, %c0_9, %c0_10], %20 {strides = array<i32>} : memref<16x8x128xf32, #tpu.memory_space<vmem>>, vector<16x8x128xf32>,
    %c0_11 = arith.constant 0 : index
    %c0_12 = arith.constant 0 : index
    %c0_13 = arith.constant 0 : index
    %22 = vector.load %arg2[%c0_11, %c0_12, %c0_13] : memref<16x8x1xi32, #tpu.memory_space<vmem>>, vector<16x8x1xi32>
    %c0_14 = arith.constant 0 : index
    %c0_15 = arith.constant 0 : index
    %23 = vector.load %arg3[%c0_14, %c0_15] : memref<8x1xi32, #tpu.memory_space<vmem>>, vector<8x1xi32>
    %c0_16 = arith.constant 0 : index
    %c0_17 = arith.constant 0 : index
    %24 = vector.load %arg7[%c0_16, %c0_17] : memref<1x128xf32, #tpu.memory_space<vmem>>, vector<1x128xf32>
    %c0_18 = arith.constant 0 : index
    %c0_19 = arith.constant 0 : index
    %25 = vector.load %arg8[%c0_18, %c0_19] : memref<1x128xf32, #tpu.memory_space<vmem>>, vector<1x128xf32>
    %26 = tpu.iota {dimensions = array<i32: 0>} : vector<16x8x1xi32>
    %27 = tpu.iota {dimensions = array<i32: 2>} : vector<1x1x128xi32>
    %28 = tpu.iota {dimensions = array<i32: 1>} : vector<1x128xi32>
    %29 = vector.shape_cast %23 : vector<8x1xi32> to vector<1x8x1xi32>
    %30 = vector.broadcast %29 : vector<1x8x1xi32> to vector<16x8x1xi32>
    %31 = arith.cmpi slt, %26, %30 : vector<16x8x1xi32>
    %32 = vector.broadcast %22 : vector<16x8x1xi32> to vector<16x8x128xi32>
    %33 = vector.broadcast %27 : vector<1x1x128xi32> to vector<16x8x128xi32>
    %34 = arith.cmpi eq, %32, %33 : vector<16x8x128xi32>
    %35 = vector.broadcast %31 : vector<16x8x1xi1> to vector<16x8x128xi1>
    %36 = arith.andi %34, %35 : vector<16x8x128xi1>
    %37 = arith.extui %36 : vector<16x8x128xi1> to vector<16x8x128xi32>
    %38 = arith.sitofp %37 : vector<16x8x128xi32> to vector<16x8x128xf32>
    %39 = arith.mulf %20, %38 : vector<16x8x128xf32>
    %cst_20 = arith.constant dense<0.000000e+00> : vector<16x8xf32>
    %40 = vector.multi_reduction <add>, %39, %cst_20 [2] : vector<16x8x128xf32> to vector<16x8xf32>
    %41 = vector.shape_cast %40 : vector<16x8xf32> to vector<16x8x1xf32>
    %cst_21 = arith.constant dense<0.000000e+00> : vector<8x1xf32>
    %42 = vector.multi_reduction <add>, %41, %cst_21 [0] : vector<16x8x1xf32> to vector<8x1xf32>
    %43 = vector.shape_cast %38 : vector<16x8x128xf32> to vector<128x128xf32>
    %44 = arith.truncf %43 : vector<128x128xf32> to vector<128x128xbf16>
    %c0_22 = arith.constant 0 : index
    %c0_23 = arith.constant 0 : index
    %45 = vector.load %arg6[%c0_22, %c0_23] : memref<128x128xf32, #tpu.memory_space<vmem>>, vector<128x128xf32>
    %46 = arith.truncf %45 : vector<128x128xf32> to vector<128x128xbf16>
    %cst_24 = arith.constant dense<0.000000e+00> : vector<128x128xf32>
    %47 = tpu.matmul %44, %46, %cst_24 {dimension_numbers = #tpu.dot_dimension_numbers<[1], [0], [0], [1], [0, 0, 1, 1], [], []>} : vector<128x128xbf16>, vector<128x128xbf16>, vector<128x128xf32> -> vector<128x128xf32>
    %48 = vector.shape_cast %47 : vector<128x128xf32> to vector<16x8x128xf32>
    %49 = vector.extract_strided_slice %48 {offsets = [0, 0, 0], sizes = [15, 8, 128], strides = [1, 1, 1]} : vector<16x8x128xf32> to vector<15x8x128xf32>
    %50 = vector.extract_strided_slice %38 {offsets = [1, 0, 0], sizes = [15, 8, 128], strides = [1, 1, 1]} : vector<16x8x128xf32> to vector<15x8x128xf32>
    %51 = arith.mulf %49, %50 : vector<15x8x128xf32>
    %cst_25 = arith.constant dense<0.000000e+00> : vector<15x8xf32>
    %52 = vector.multi_reduction <add>, %51, %cst_25 [2] : vector<15x8x128xf32> to vector<15x8xf32>
    %53 = vector.shape_cast %52 : vector<15x8xf32> to vector<15x8x1xf32>
    %cst_26 = arith.constant dense<0.000000e+00> : vector<8x1xf32>
    %54 = vector.multi_reduction <add>, %53, %cst_26 [0] : vector<15x8x1xf32> to vector<8x1xf32>
    %55 = vector.extract_strided_slice %38 {offsets = [0, 0, 0], sizes = [1, 8, 128], strides = [1, 1, 1]} : vector<16x8x128xf32> to vector<1x8x128xf32>
    %56 = vector.shape_cast %55 : vector<1x8x128xf32> to vector<8x128xf32>
    %57 = vector.broadcast %24 : vector<1x128xf32> to vector<8x128xf32>
    %58 = arith.mulf %56, %57 : vector<8x128xf32>
    %cst_27 = arith.constant dense<0.000000e+00> : vector<8xf32>
    %59 = vector.multi_reduction <add>, %58, %cst_27 [1] : vector<8x128xf32> to vector<8xf32>
    %60 = vector.shape_cast %59 : vector<8xf32> to vector<8x1xf32>
    %c1_i32 = arith.constant 1 : i32
    %61 = vector.broadcast %c1_i32 : i32 to vector<8x1xi32>
    %62 = arith.subi %23, %61 : vector<8x1xi32>
    %63 = vector.shape_cast %62 : vector<8x1xi32> to vector<1x8x1xi32>
    %64 = vector.broadcast %63 : vector<1x8x1xi32> to vector<16x8x1xi32>
    %65 = arith.cmpi eq, %26, %64 : vector<16x8x1xi32>
    %66 = arith.extui %65 : vector<16x8x1xi1> to vector<16x8x1xi32>
    %67 = arith.sitofp %66 : vector<16x8x1xi32> to vector<16x8x1xf32>
    %68 = arith.sitofp %22 : vector<16x8x1xi32> to vector<16x8x1xf32>
    %69 = arith.mulf %67, %68 : vector<16x8x1xf32>
    %cst_28 = arith.constant dense<0.000000e+00> : vector<8x1xf32>
    %70 = vector.multi_reduction <add>, %69, %cst_28 [0] : vector<16x8x1xf32> to vector<8x1xf32>
    %71 = arith.fptosi %70 : vector<8x1xf32> to vector<8x1xi32>
    %72 = vector.broadcast %71 : vector<8x1xi32> to vector<8x128xi32>
    %73 = vector.broadcast %28 : vector<1x128xi32> to vector<8x128xi32>
    %74 = arith.cmpi eq, %72, %73 : vector<8x128xi32>
    %75 = arith.extui %74 : vector<8x128xi1> to vector<8x128xi32>
    %76 = arith.sitofp %75 : vector<8x128xi32> to vector<8x128xf32>
    %77 = vector.broadcast %25 : vector<1x128xf32> to vector<8x128xf32>
    %78 = arith.mulf %76, %77 : vector<8x128xf32>
    %cst_29 = arith.constant dense<0.000000e+00> : vector<8xf32>
    %79 = vector.multi_reduction <add>, %78, %cst_29 [1] : vector<8x128xf32> to vector<8xf32>
    %80 = vector.shape_cast %79 : vector<8xf32> to vector<8x1xf32>
    %81 = arith.addf %42, %54 : vector<8x1xf32>
    %82 = arith.addf %81, %60 : vector<8x1xf32>
    %83 = arith.addf %82, %80 : vector<8x1xf32>
    %c0_30 = arith.constant 0 : index
    %c0_31 = arith.constant 0 : index
    %84 = vector.load %arg6[%c0_30, %c0_31] : memref<128x128xf32, #tpu.memory_space<vmem>>, vector<128x128xf32>
    %cst_32 = arith.constant dense<0xFF800000> : vector<128xf32>
    %85 = vector.multi_reduction <maximumf>, %84, %cst_32 [0] : vector<128x128xf32> to vector<128xf32>
    %86 = vector.shape_cast %85 : vector<128xf32> to vector<1x128xf32>
    %c0_33 = arith.constant 0 : index
    %c0_34 = arith.constant 0 : index
    %87 = vector.load %arg6[%c0_33, %c0_34] : memref<128x128xf32, #tpu.memory_space<vmem>>, vector<128x128xf32>
    %88 = vector.broadcast %86 : vector<1x128xf32> to vector<128x128xf32>
    %89 = arith.subf %87, %88 : vector<128x128xf32>
    %90 = math.exp %89 : vector<128x128xf32>
    %91 = vector.extract_strided_slice %20 {offsets = [0, 0, 0], sizes = [1, 8, 128], strides = [1, 1, 1]} : vector<16x8x128xf32> to vector<1x8x128xf32>
    %92 = vector.shape_cast %91 : vector<1x8x128xf32> to vector<8x128xf32>
    %93 = vector.broadcast %24 : vector<1x128xf32> to vector<8x128xf32>
    %94 = arith.addf %92, %93 : vector<8x128xf32>
    %c1_i32_35 = arith.constant 1 : i32
    %c15_i32 = arith.constant 15 : i32
    %95 = arith.addi %c1_i32_35, %c15_i32 : i32
    %c1_i32_36 = arith.constant 1 : i32
    %96 = scf.for %arg11 = %c1_i32_35 to %95 step %c1_i32_36 iter_args(%arg12 = %94) -> (vector<8x128xf32>)  : i32 {
      %112 = arith.index_cast %arg11 : i32 to index
      %c0_42 = arith.constant 0 : index
      %c0_43 = arith.constant 0 : index
      %113 = vector.load %arg10[%112, %c0_42, %c0_43] : memref<16x8x128xf32, #tpu.memory_space<vmem>>, vector<1x8x128xf32>
      %114 = vector.shape_cast %113 : vector<1x8x128xf32> to vector<8x128xf32>
      %cst_44 = arith.constant dense<0xFF800000> : vector<8xf32>
      %115 = vector.multi_reduction <maximumf>, %arg12, %cst_44 [1] : vector<8x128xf32> to vector<8xf32>
      %116 = vector.shape_cast %115 : vector<8xf32> to vector<8x1xf32>
      %117 = vector.broadcast %116 : vector<8x1xf32> to vector<8x128xf32>
      %118 = arith.subf %arg12, %117 : vector<8x128xf32>
      %119 = math.exp %118 : vector<8x128xf32>
      %cst_45 = arith.constant dense<0.000000e+00> : vector<8x128xf32>
      %120 = tpu.matmul %119, %90, %cst_45 {dimension_numbers = #tpu.dot_dimension_numbers<[1], [0], [0], [1], [0, 0, 1, 1], [], []>} : vector<8x128xf32>, vector<128x128xf32>, vector<8x128xf32> -> vector<8x128xf32>
      %121 = math.log %120 : vector<8x128xf32>
      %122 = vector.broadcast %116 : vector<8x1xf32> to vector<8x128xf32>
      %123 = arith.addf %121, %122 : vector<8x128xf32>
      %124 = vector.broadcast %86 : vector<1x128xf32> to vector<8x128xf32>
      %125 = arith.addf %123, %124 : vector<8x128xf32>
      %126 = arith.addf %125, %114 : vector<8x128xf32>
      %127 = vector.broadcast %arg11 : i32 to vector<8x1xi32>
      %128 = arith.cmpi slt, %127, %23 : vector<8x1xi32>
      %129 = vector.shape_cast %128 : vector<8x1xi1> to vector<8x1xi1>
      %130 = vector.broadcast %129 : vector<8x1xi1> to vector<8x128xi1>
      %131 = arith.select %130, %126, %arg12 : vector<8x128xi1>, vector<8x128xf32>
      scf.yield %131 : vector<8x128xf32>
    }
    %c15_i32_37 = arith.constant 15 : i32
    %97 = vector.broadcast %25 : vector<1x128xf32> to vector<8x128xf32>
    %98 = arith.addf %96, %97 : vector<8x128xf32>
    %cst_38 = arith.constant dense<0xFF800000> : vector<8xf32>
    %99 = vector.multi_reduction <maximumf>, %98, %cst_38 [1] : vector<8x128xf32> to vector<8xf32>
    %100 = vector.shape_cast %99 : vector<8xf32> to vector<8x1xf32>
    %101 = vector.broadcast %100 : vector<8x1xf32> to vector<8x128xf32>
    %102 = arith.subf %98, %101 : vector<8x128xf32>
    %103 = math.exp %102 : vector<8x128xf32>
    %cst_39 = arith.constant dense<0.000000e+00> : vector<8xf32>
    %104 = vector.multi_reduction <add>, %103, %cst_39 [1] : vector<8x128xf32> to vector<8xf32>
    %105 = vector.shape_cast %104 : vector<8xf32> to vector<8x1xf32>
    %106 = math.log %105 : vector<8x1xf32>
    %107 = arith.addf %106, %100 : vector<8x1xf32>
    %108 = arith.subf %107, %83 : vector<8x1xf32>
    %109 = vector.shape_cast %108 : vector<8x1xf32> to vector<8x1xf32>
    %110 = vector.broadcast %109 : vector<8x1xf32> to vector<8x128xf32>
    %c0_40 = arith.constant 0 : index
    %c0_41 = arith.constant 0 : index
    %111 = vector.load %arg9[%c0_40, %c0_41] : memref<8x128xf32, #tpu.memory_space<vmem>>, vector<8x128xf32>
    tpu.vector_store %arg9[%c0_40, %c0_41], %110 {strides = array<i32>} : memref<8x128xf32, #tpu.memory_space<vmem>>, vector<8x128xf32>,
    return
  }
  func.func @transform_0(%arg0: i32) -> (i32, i32, i32) {
    %c0_i32 = arith.constant 0 : i32
    %c0_i32_0 = arith.constant 0 : i32
    %c0_i32_1 = arith.constant 0 : i32
    return %c0_i32, %arg0, %c0_i32_0 : i32, i32, i32
  }
  func.func @transform_1(%arg0: i32) -> (i32, i32, i32) {
    %c0_i32 = arith.constant 0 : i32
    %c0_i32_0 = arith.constant 0 : i32
    %c0_i32_1 = arith.constant 0 : i32
    return %c0_i32, %arg0, %c0_i32_0 : i32, i32, i32
  }
  func.func @transform_2(%arg0: i32) -> (i32, i32) {
    %c0_i32 = arith.constant 0 : i32
    %c0_i32_0 = arith.constant 0 : i32
    return %arg0, %c0_i32 : i32, i32
  }
  func.func @transform_3(%arg0: i32) -> (i32, i32) {
    %c0_i32 = arith.constant 0 : i32
    %c0_i32_0 = arith.constant 0 : i32
    %c0_i32_1 = arith.constant 0 : i32
    return %c0_i32, %c0_i32_0 : i32, i32
  }
  func.func @transform_4(%arg0: i32) -> (i32, i32) {
    %c0_i32 = arith.constant 0 : i32
    %c0_i32_0 = arith.constant 0 : i32
    %c0_i32_1 = arith.constant 0 : i32
    return %c0_i32, %c0_i32_0 : i32, i32
  }
  func.func @transform_5(%arg0: i32) -> (i32, i32) {
    %c0_i32 = arith.constant 0 : i32
    %c0_i32_0 = arith.constant 0 : i32
    %c0_i32_1 = arith.constant 0 : i32
    return %c0_i32, %c0_i32_0 : i32, i32
  }
  func.func @transform_6(%arg0: i32) -> (i32, i32) {
    %c0_i32 = arith.constant 0 : i32
    %c0_i32_0 = arith.constant 0 : i32
    %c0_i32_1 = arith.constant 0 : i32
    return %c0_i32, %c0_i32_0 : i32, i32
  }
  func.func @transform_7(%arg0: i32) -> (i32, i32) {
    %c0_i32 = arith.constant 0 : i32
    %c0_i32_0 = arith.constant 0 : i32
    %c0_i32_1 = arith.constant 0 : i32
    return %c0_i32, %c0_i32_0 : i32, i32
  }
  func.func @transform_8(%arg0: i32) -> (i32, i32) {
    %c0_i32 = arith.constant 0 : i32
    %c0_i32_0 = arith.constant 0 : i32
    return %arg0, %c0_i32 : i32, i32
  }
}

</mosaic_0001>

<bundles_post_ra>
// kernel: tpu_custom_call.1
= control target key start
LH: loop header
LB: loop body
LE: loop exit
PB: predicated region body
PF: predicated region fallthrough
CT: control target
= control target key end

     0   :  { %13 = vsyncpa [#allocation4], 0  ;;  %s2589_s0 = inlined_call_operand.hbm [shape: bf16[16,8,32], index: 0, kind: input, shape index: {}]   ;;  %s2590_s1 = inlined_call_operand.vmem [shape: s32[16,8,1], index: 1, kind: input, shape index: {}]   ;;  %s2591_s2 = inlined_call_operand.vmem [shape: s32[8,1], index: 2, kind: input, shape index: {}]   ;;  %s2592_s3 = inlined_call_operand.vmem [shape: bf16[32,128], index: 3, kind: input, shape index: {}]   ;;  %s2593_s4 = inlined_call_operand.vmem [shape: f32[1,128], index: 4, kind: input, shape index: {}]   ;;  %s2594_s5 = inlined_call_operand.vmem [shape: f32[128,128], index: 5, kind: input, shape index: {}]   ;;  %s2595_s6 = inlined_call_operand.vmem [shape: f32[1,128], index: 6, kind: input, shape index: {}]   ;;  %s2596_s7 = inlined_call_operand.vmem [shape: f32[1,128], index: 7, kind: input, shape index: {}]   ;;  %s2597_s8 = inlined_call_operand.hbm [shape: f32[8,128], index: 8, kind: output, shape index: {}]  }
   0x1   :  { %14 = vsyncpa [#allocation5], 0  ;;  %s1671_s27 = smov [#allocation3]  }
   0x2   :  { %s20_s28 = sshll.u32 %s1671_s27, 4  ;;  %s21_s28 = int_to_ptr.vmem [resolvable:$true] %s20_s28 }
   0x3   :  { %s1619_s29 = scalar_lea.vmem %s21_s28, 1024  ;;  %p1624_p1 = scmp.lt.s32.totalorder %s21_s28, %s21_s28 }
   0x4   :  { %p1620_p0 = scmp.ne.s32.totalorder %s21_s28, %s1619_s29  ;;  %p1625_p2 = scmp.lt.s32.totalorder %s1619_s29, %s1619_s29 }
   0x6   :  { %p1626_p3 = por %p1625_p2, %p1624_p1 }
   0x8   :  { %p1627_p4 = pnand %p1626_p3, %p1620_p0 }
   0xa   :  { %1630 = shalt.err (!%p1627_p4)
}
   0xb   :  { %s1672_s30 = smov 64   ;;  %s1673_s9 = smov 4  }
   0xc   :  { %26 = dma.hbm_to_vmem [thread:$0]  %s2589_s0, 1024, %s21_s28, [#allocation4], %s1672_s30, %s1672_s30, %s1673_s9  }
   0xd   :  { %1659 = dma.done.wait [#allocation4], 1024  }
   0xe   :  { %1660 = vsyncadd [#allocation4], 4294966272  ;;  %v1674_v0 = vmov 0   ;;  %v425_v1 = vld [vmem:[%s2590_s1 + $0x18] sm:$0xff]  ;;  %v1737_v2 = vld [vmem:[%s2591_s2] sm:$0xff]  ;;  %vm2598_vm0 = vcmask 7168  }
   0xf   :  { %1495 = vset.pattern.permute.xlu1 %v1674_v0  ;;  %1494 = vset.pattern.permute.xlu0 %v1674_v0  ;;  %2617 = vst [vmem:[#allocation9_spill] sm:$0xff] %v1737_v2  ;;  %v422_v3 = vld [vmem:[%s2590_s1] sm:$0xff]  ;;  %vm108_vm1 = vcmask 261120   ;;  %v1743_v4 = vadd.s32 4294967295, %v1737_v2  ;;  %v962_v5 = vcvt.s32.f32 %v425_v1  ;;  %v1496_v7 = vld [vmem:[%s2592_s3 + $0x8] sm:$0xff]   ;;  %vm443_vm2 = vcmp.gt.s32.totalorder %v1737_v2, 0 }
  0x10   :  { %469 = vperm.xlu1 %1495, %v425_v1   ;;  %460 = vperm.xlu0 %1494, %v422_v3   ;;  %v959_v6 = vcvt.s32.f32 %v422_v3  ;;  %v423_v8 = vld [vmem:[%s2590_s1 + $0x8] sm:$0xff]  ;;  %v523_v9 = vsel %vm443_vm2, 1, %v1674_v0  ;;  %v1497_v10 = vld [vmem:[%s2592_s3] sm:$0xff]   ;;  %v424_v11 = vld [vmem:[%s2590_s1 + $0x10] sm:$0xff]  ;;  %v2604_v12 = vmov 0.0   ;;  %vm444_vm6 = vcmp.gt.s32.totalorder %v1737_v2, 1 }
  0x11   :  { %vm914_vm3 = vcmp.eq.s32.totalorder %v1743_v4, 3  ;;  %vm911_vm4 = vcmp.eq.s32.totalorder %v1743_v4, 0  ;;  %1363 = vmatprep.subr.bf16.mxu0 %v1496_v7  ;;  %vm912_vm5 = vcmp.eq.s32.totalorder %v1743_v4, 1  ;;  %v960_v16 = vcvt.s32.f32 %v423_v8  ;;  %v1498_v17 = vld [vmem:[#allocation3] sm:$0xff]   ;;  %v1499_v24 = vld [vmem:[#allocation3 + $0x8] sm:$0xff]   ;;  %v1500_v33 = vld [vmem:[#allocation3 + $0x10] sm:$0xff]  }
  0x12   :  { %v1304_v13 = vsel %vm914_vm3, 1.0, %v2604_v12  ;;  %v1301_v14 = vsel %vm911_vm4, 1.0, %v2604_v12  ;;  %1364 = vmatpush3.bf16.msra.mxu0 %v1496_v7  ;;  %v1302_v15 = vsel %vm912_vm5, 1.0, %v2604_v12  ;;  %vm913_vm7 = vcmp.eq.s32.totalorder %v1743_v4, 2  ;;  %1367 = vmatprep.mubr.msk.bf16.mxu0 %vm108_vm1, %v1498_v17  ;;  %v427_v27 = vld [vmem:[%s2590_s1 + $0x28] sm:$0xff]  ;;  %v426_v28 = vld [vmem:[%s2590_s1 + $0x20] sm:$0xff] }
  0x13   :  { %v978_v18 = vmul.f32 %v1304_v13, %v962_v5  ;;  %v975_v19 = vmul.f32 %v1301_v14, %v959_v6  ;;  %v976_v20 = vmul.f32 %v1302_v15, %v960_v16  ;;  %1365 = vmatprep.subr.bf16.mxu0 %v1497_v10  ;;  %v524_v21 = vsel %vm444_vm6, 1, %v1674_v0  ;;  %v429_v43 = vld [vmem:[%s2590_s1 + $0x38] sm:$0xff]  ;;  %v428_v47 = vld [vmem:[%s2590_s1 + $0x30] sm:$0xff]  ;;  %v1502_v52 = vld [vmem:[#allocation3 + $0x20] sm:$0xff]  }
  0x14   :  { %540 = vperm.xlu1 %1495, %v523_v9   ;;  %463 = vperm.xlu0 %1494, %v423_v8   ;;  %v1303_v22 = vsel %vm913_vm7, 1.0, %v2604_v12  ;;  %v961_v23 = vcvt.s32.f32 %v424_v11  ;;  %vm446_vm8 = vcmp.gt.s32.totalorder %v1737_v2, 3  ;;  %vm445_vm9 = vcmp.gt.s32.totalorder %v1737_v2, 2  ;;  %v1501_v50 = vld [vmem:[#allocation3 + $0x18] sm:$0xff]   ;;  %v1807_v56 = vld [vmem:[%s2590_s1 + $0x48] sm:$0xff]  ;;  %v1822_v1 = vld [vmem:[%s2590_s1 + $0x40] sm:$0xff] }
  0x15   :  { %v997_v25 = vsel %vm2598_vm0, %v978_v18, 0.0  ;;  %v992_v26 = vsel %vm2598_vm0, %v975_v19, 0.0  ;;  %v993_v29 = vsel %vm2598_vm0, %v976_v20, 0.0  ;;  %v526_v31 = vsel %vm446_vm8, 1, %v1674_v0  ;;  %v1843_v15 = vld [vmem:[%s2590_s1 + $0x50] sm:$0xff]  ;;  %v1503_v20 = vld [vmem:[#allocation3 + $0x28] sm:$0xff]  }
  0x16   :  { %1366 = vmatpush3.bf16.msra.mxu0 %v1497_v10  ;;  %v977_v30 = vmul.f32 %v1303_v22, %v961_v23  ;;  %v525_v32 = vsel %vm445_vm9, 1, %v1674_v0  ;;  %v994_v34 = vadd.f32 %v993_v29, %v992_v26  ;;  %vm916_vm10 = vcmp.eq.s32.totalorder %v1743_v4, 5  ;;  %v1856_v26 = vld [vmem:[%s2590_s1 + $0x68] sm:$0xff] }
  0x17   :  { %v964_v35 = vcvt.s32.f32 %v427_v27  ;;  %vm915_vm11 = vcmp.eq.s32.totalorder %v1743_v4, 4  ;;  %v1306_v37 = vsel %vm916_vm10, 1.0, %v2604_v12  ;;  %v963_v39 = vcvt.s32.f32 %v426_v28 }
  0x18   :  { %543 = vperm.xlu1 %1495, %v524_v21   ;;  %466 = vperm.xlu0 %1494, %v424_v11   ;;  %v995_v36 = vsel %vm2598_vm0, %v977_v30, 0.0  ;;  %v1305_v38 = vsel %vm915_vm11, 1.0, %v2604_v12  ;;  %vm448_vm12 = vcmp.gt.s32.totalorder %v1737_v2, 5  ;;  %vm447_vm13 = vcmp.gt.s32.totalorder %v1737_v2, 4  ;;  %v1836_v11 = vld [vmem:[%s2590_s1 + $0x58] sm:$0xff] }
  0x19   :  { %v996_v40 = vadd.f32 %v995_v36, %v994_v34  ;;  %1368 = vmatmul.mubr.msk.bf16.vlgmr.msra.gmra.mxu0 %vm108_vm1, %v1499_v24  ;;  %v980_v41 = vmul.f32 %v1306_v37, %v964_v35  ;;  %v979_v42 = vmul.f32 %v1305_v38, %v963_v39  ;;  %vm918_vm14 = vcmp.eq.s32.totalorder %v1743_v4, 7  ;;  %v1504_v24 = vld [vmem:[#allocation3 + $0x30] sm:$0xff]   ;;  %v1880_v38 = vld [vmem:[%s2590_s1 + $0x78] sm:$0xff] }
  0x1a   :  { %1371 = vmatprep.mubr.msk.bf16.mxu0 %vm108_vm1, %v1500_v33  ;;  %v1308_v45 = vsel %vm918_vm14, 1.0, %v2604_v12  ;;  %v966_v46 = vcvt.s32.f32 %v429_v43  ;;  %vm917_vm15 = vcmp.eq.s32.totalorder %v1743_v4, 6  ;;  %v965_v51 = vcvt.s32.f32 %v428_v47 }
  0x1b   :  { %v998_v44 = vadd.f32 %v997_v25, %v996_v40  ;;  %v1001_v48 = vsel %vm2598_vm0, %v980_v41, 0.0  ;;  %v999_v49 = vsel %vm2598_vm0, %v979_v42, 0.0  ;;  %v1307_v55 = vsel %vm917_vm15, 1.0, %v2604_v12 }
  0x1c   :  { %549 = vperm.xlu1 %1495, %v526_v31   ;;  %546 = vperm.xlu0 %1494, %v525_v32   ;;  %v982_v54 = vmul.f32 %v1308_v45, %v966_v46  ;;  %v528_v57 = vsel %vm448_vm12, 1, %v1674_v0  ;;  %v981_v58 = vmul.f32 %v1307_v55, %v965_v51  ;;  %vm920_vm2 = vcmp.eq.s32.totalorder %v1743_v4, 9  ;;  %v1867_v31 = vld [vmem:[%s2590_s1 + $0x60] sm:$0xff]  ;;  %v1899_v45 = vld [vmem:[%s2594_s5 + $0x78] sm:$0xff]  ;;  %v1930_v55 = vld [vmem:[%s2594_s5 + $0x50] sm:$0xff] }
  0x1d   :  { %v1000_v53 = vadd.f32 %v999_v49, %v998_v44  ;;  %v968_v59 = vcvt.s32.f32 %v1807_v56  ;;  %v527_v60 = vsel %vm447_vm13, 1, %v1674_v0  ;;  %v1310_v63 = vsel %vm920_vm2, 1.0, %v2604_v12  ;;  %v1894_v44 = vld [vmem:[%s2594_s5 + $0x70] sm:$0xff]  ;;  %v1505_v49 = vld [vmem:[#allocation3 + $0x38] sm:$0xff]  }
  0x1e   :  { %v1005_v61 = vsel %vm2598_vm0, %v982_v54, 0.0  ;;  %v1003_v3 = vsel %vm2598_vm0, %v981_v58, 0.0  ;;  %vm919_vm3 = vcmp.eq.s32.totalorder %v1743_v4, 8  ;;  %v967_v6 = vcvt.s32.f32 %v1822_v1  ;;  %v1940_v58 = vld [vmem:[%s2594_s5 + $0x30] sm:$0xff] }
  0x1f   :  { %v1002_v62 = vadd.f32 %v1001_v48, %v1000_v53  ;;  %v984_v5 = vmul.f32 %v1310_v63, %v968_v59  ;;  %v1309_v8 = vsel %vm919_vm3, 1.0, %v2604_v12  ;;  %vm450_vm4 = vcmp.gt.s32.totalorder %v1737_v2, 7  ;;  %v1959_v63 = vld [vmem:[%s2594_s5 + $0x10] sm:$0xff] }
  0x20   :  { %475 = vperm.xlu1 %1495, %v427_v27   ;;  %472 = vperm.xlu0 %1494, %v426_v28   ;;  %vm449_vm5 = vcmp.gt.s32.totalorder %v1737_v2, 6  ;;  %v983_v10 = vmul.f32 %v1309_v8, %v967_v6  ;;  %vm922_vm6 = vcmp.eq.s32.totalorder %v1743_v4, 11  ;;  %v970_v14 = vcvt.s32.f32 %v1836_v11  ;;  %v1984_v8 = vld [vmem:[%s2594_s5 + $0x8] sm:$0xff] }
  0x21   :  { %1372 = vmatmul.mubr.msk.bf16.gmra.mxu0 %vm108_vm1, %v1501_v50  ;;  %v1004_v7 = vadd.f32 %v1003_v3, %v1002_v62  ;;  %v1009_v9 = vsel %vm2598_vm0, %v984_v5, 0.0  ;;  %vm921_vm7 = vcmp.eq.s32.totalorder %v1743_v4, 10  ;;  %v1312_v17 = vsel %vm922_vm6, 1.0, %v2604_v12  ;;  %v1954_v62 = vld [vmem:[%s2594_s5 + $0x20] sm:$0xff]  ;;  %v1970_v3 = vld [vmem:[%s2594_s5 + $0x28] sm:$0xff] }
  0x22   :  { %1375 = vmatprep.mubr.msk.bf16.mxu0 %vm108_vm1, %v1502_v52  ;;  %v1007_v16 = vsel %vm2598_vm0, %v983_v10, 0.0  ;;  %v1311_v18 = vsel %vm921_vm7, 1.0, %v2604_v12  ;;  %v969_v19 = vcvt.s32.f32 %v1843_v15  ;;  %v986_v22 = vmul.f32 %v1312_v17, %v970_v14  ;;  %v1914_v52 = vld [vmem:[%s2594_s5 + $0x60] sm:$0xff]  ;;  %v1998_v14 = vld [vmem:[%s2594_s5 + $0x48] sm:$0xff] }
  0x23   :  { %v1006_v13 = vadd.f32 %v1005_v61, %v1004_v7  ;;  %v530_v23 = vsel %vm450_vm4, 1, %v1674_v0  ;;  %vm924_vm8 = vcmp.eq.s32.totalorder %v1743_v4, 13  ;;  %v529_v27 = vsel %vm449_vm5, 1, %v1674_v0  ;;  %v1979_v7 = vld [vmem:[%s2594_s5] sm:$0xff] }
  0x24   :  { %555 = vperm.xlu1 %1495, %v528_v57   ;;  %552 = vperm.xlu0 %1494, %v527_v60   ;;  %v985_v25 = vmul.f32 %v1311_v18, %v969_v19  ;;  %v1314_v29 = vsel %vm924_vm8, 1.0, %v2604_v12  ;;  %v972_v30 = vcvt.s32.f32 %v1856_v26  ;;  %v1013_v32 = vsel %vm2598_vm0, %v986_v22, 0.0  ;;  %v1935_v57 = vld [vmem:[%s2594_s5 + $0x58] sm:$0xff] }
  0x25   :  { %v1008_v21 = vadd.f32 %v1007_v16, %v1006_v13  ;;  %vm923_vm9 = vcmp.eq.s32.totalorder %v1743_v4, 12  ;;  %v971_v34 = vcvt.s32.f32 %v1867_v31  ;;  %vm926_vm10 = vcmp.eq.s32.totalorder %v1743_v4, 15  ;;  %v1993_v13 = vld [vmem:[%s2594_s5 + $0x40] sm:$0xff] }
  0x26   :  { %v1011_v33 = vsel %vm2598_vm0, %v985_v25, 0.0  ;;  %v1874_v36 = vmul.f32 %v1314_v29, %v972_v30  ;;  %v1313_v37 = vsel %vm923_vm9, 1.0, %v2604_v12  ;;  %v974_v40 = vcvt.s32.f32 %v1880_v38 }
  0x27   :  { %v1010_v28 = vadd.f32 %v1009_v9, %v1008_v21  ;;  %v987_v39 = vmul.f32 %v1313_v37, %v971_v34  ;;  %v1316_v42 = vsel %vm926_vm10, 1.0, %v2604_v12  ;;  %vm925_vm11 = vcmp.eq.s32.totalorder %v1743_v4, 14  ;;  %v1919_v4 = vld [vmem:[%s2594_s5 + $0x68] sm:$0xff] }
  0x28   :  { %481 = vperm.xlu1 %1495, %v429_v43   ;;  %478 = vperm.xlu0 %1494, %v428_v47   ;;  %v1889_v43 = vld [vmem:[%s2590_s1 + $0x70] sm:$0xff]  ;;  %v1902_v47 = vmul.f32 %v1316_v42, %v974_v40  ;;  %vm452_vm12 = vcmp.gt.s32.totalorder %v1737_v2, 9  ;;  %vm451_vm13 = vcmp.gt.s32.totalorder %v1737_v2, 8  ;;  %v1315_v51 = vsel %vm925_vm11, 1.0, %v2604_v12 }
  0x29   :  { %1376 = vmatmul.mubr.msk.bf16.gmra.mxu0 %vm108_vm1, %v1503_v20  ;;  %v1012_v35 = vadd.f32 %v1011_v33, %v1010_v28  ;;  %v1015_v46 = vsel %vm2598_vm0, %v987_v39, 0.0  ;;  %v973_v48 = vcvt.s32.f32 %v1889_v43  ;;  %v745_v54 = vpack.c.bf16 %v1899_v45, %v1894_v44 }
  0x2a   :  { %1379 = vmatprep.mubr.msk.bf16.mxu0 %vm108_vm1, %v1504_v24  ;;  %v532_v59 = vsel %vm452_vm12, 1, %v1674_v0  ;;  %v531_v60 = vsel %vm451_vm13, 1, %v1674_v0  ;;  %v744_v61 = vpack.c.bf16 %v1919_v4, %v1914_v52  ;;  %v1044_v5 = vmax.f32 %v1959_v63, %v1940_v58 }
  0x2b   :  { %v1014_v41 = vadd.f32 %v1013_v32, %v1012_v35  ;;  %v1921_v53 = vmul.f32 %v1315_v51, %v973_v48  ;;  %1383 = vmatprep.subr.bf16.mxu0 %v745_v54  ;;  %1450 = vmatprep.subr.bf16.mxu1 %v745_v54  ;;  %v1042_v9 = vmax.f32 %v1979_v7, %v1954_v62  ;;  %vm453_vm14 = vcmp.gt.s32.totalorder %v1737_v2, 10 }
  0x2c   :  { %561 = vperm.xlu1 %1495, %v530_v23   ;;  %558 = vperm.xlu0 %1494, %v529_v27   ;;  %v1043_v10 = vmax.f32 %v1984_v8, %v1970_v3  ;;  %v1048_v16 = vmax.f32 %v1044_v5, %v1930_v55  ;;  %v743_v18 = vpack.c.bf16 %v1935_v57, %v1930_v55  ;;  %v533_v28 = vsel %vm453_vm14, 1, %v1674_v0 }
  0x2d   :  { %v1908_v50 = vadd.f32 %v1015_v46, %v1014_v41  ;;  %1458 = vmatpush3.bf16.msra.mxu1 %v745_v54  ;;  %1384 = vmatpush3.bf16.msra.mxu0 %v745_v54  ;;  %v1046_v19 = vmax.f32 %v1042_v9, %v1993_v13  ;;  %v742_v29 = vpack.c.bf16 %v1998_v14, %v1993_v13  ;;  %vm456_vm15 = vcmp.gt.s32.totalorder %v1737_v2, 13 }
  0x2e   :  { %1451 = vmatprep.subr.bf16.mxu1 %v744_v61  ;;  %1385 = vmatprep.subr.bf16.mxu0 %v744_v61  ;;  %v1047_v20 = vmax.f32 %v1043_v10, %v1998_v14  ;;  %v1052_v21 = vmax.f32 %v1048_v16, %v1894_v44  ;;  %vm455_vm2 = vcmp.gt.s32.totalorder %v1737_v2, 12  ;;  %v536_v34 = vsel %vm456_vm15, 1, %v1674_v0 }
  0x2f   :  { %v1050_v23 = vmax.f32 %v1046_v19, %v1914_v52  ;;  %v535_v35 = vsel %vm455_vm2, 1, %v1674_v0  ;;  %v740_v37 = vpack.c.bf16 %v1970_v3, %v1954_v62  ;;  %vm458_vm3 = vcmp.gt.s32.totalorder %v1737_v2, 15 }
  0x30   :  { %487 = vperm.xlu1 %1495, %v1807_v56   ;;  %484 = vperm.xlu0 %1494, %v1822_v1   ;;  %v1945_v56 = vld [vmem:[%s2594_s5 + $0x38] sm:$0xff]  ;;  %v1051_v24 = vmax.f32 %v1047_v20, %v1919_v4  ;;  %vm457_vm4 = vcmp.gt.s32.totalorder %v1737_v2, 14  ;;  %v538_v42 = vsel %vm458_vm3, 1, %v1674_v0  ;;  %v738_v48 = vpack.c.bf16 %v1984_v8, %v1979_v7 }
  0x31   :  { %v1964_v1 = vld [vmem:[%s2594_s5 + $0x18] sm:$0xff]  ;;  %1380 = vmatmul.mubr.msk.bf16.gmra.mxu0 %vm108_vm1, %v1505_v49  ;;  %vm454_vm1 = vcmp.gt.s32.totalorder %v1737_v2, 11  ;;  %1459 = vmatpush3.bf16.msra.mxu1 %v744_v61  ;;  %v537_v46 = vsel %vm457_vm4, 1, %v1674_v0 }
  0x32   :  { %v1045_v6 = vmax.f32 %v1964_v1, %v1945_v56  ;;  %1386 = vmatpush3.bf16.msra.mxu0 %v744_v61  ;;  %1452 = vmatprep.subr.bf16.mxu1 %v743_v18  ;;  %v534_v27 = vsel %vm454_vm1, 1, %v1674_v0  ;;  %v1054_v30 = vmax.f32 %v1050_v23, %v1051_v24 }
  0x33   :  { %1387 = vmatprep.subr.bf16.mxu0 %v743_v18 }
  0x34   :  { %567 = vperm.xlu1 %1495, %v532_v59   ;;  %564 = vperm.xlu0 %1494, %v531_v60   ;;  %v1049_v17 = vmax.f32 %v1045_v6, %v1935_v57 }
  0x35   :  { %1460 = vmatpush3.bf16.msra.mxu1 %v743_v18 }
  0x36   :  { %v1053_v22 = vmax.f32 %v1049_v17, %v1899_v45  ;;  %1388 = vmatpush3.bf16.msra.mxu0 %v743_v18  ;;  %1453 = vmatprep.subr.bf16.mxu1 %v742_v29 }
  0x37   :  { %1389 = vmatprep.subr.bf16.mxu0 %v742_v29 }
  0x38   :  { %493 = vperm.xlu1 %1495, %v1836_v11   ;;  %490 = vperm.xlu0 %1494, %v1843_v15   ;;  %v1055_v25 = vmax.f32 %v1052_v21, %v1053_v22  ;;  %v741_v11 = vpack.c.bf16 %v1945_v56, %v1940_v58 }
  0x39   :  { %1461 = vmatpush3.bf16.msra.mxu1 %v742_v29 }
  0x3a   :  { %v1056_v32 = vmax.f32 %v1054_v30, %v1055_v25  ;;  %1390 = vmatpush3.bf16.msra.mxu0 %v742_v29  ;;  %1454 = vmatprep.subr.bf16.mxu1 %v741_v11 }
  0x3b   :  { %1391 = vmatprep.subr.bf16.mxu0 %v741_v11 }
  0x3c   :  { %573 = vperm.xlu1 %1495, %v534_v27   ;;  %570 = vperm.xlu0 %1494, %v533_v28   ;;  %v1057_v15 = vrot.slane %v1056_v32, 4 }
  0x3d   :  { %1462 = vmatpush3.bf16.msra.mxu1 %v741_v11 }
  0x3e   :  { %v1058_v33 = vmax.f32 %v1056_v32, %v1057_v15  ;;  %1392 = vmatpush3.bf16.msra.mxu0 %v741_v11  ;;  %1455 = vmatprep.subr.bf16.mxu1 %v740_v37 }
  0x3f   :  { %1393 = vmatprep.subr.bf16.mxu0 %v740_v37 }
  0x40   :  { %499 = vperm.xlu1 %1495, %v1856_v26   ;;  %496 = vperm.xlu0 %1494, %v1867_v31   ;;  %v1059_v39 = vrot.slane %v1058_v33, 2  ;;  %v739_v26 = vpack.c.bf16 %v1964_v1, %v1959_v63 }
  0x41   :  { %1463 = vmatpush3.bf16.msra.mxu1 %v740_v37 }
  0x42   :  { %v1060_v40 = vmax.f32 %v1058_v33, %v1059_v39  ;;  %1394 = vmatpush3.bf16.msra.mxu0 %v740_v37  ;;  %1456 = vmatprep.subr.bf16.mxu1 %v739_v26 }
  0x43   :  { %1395 = vmatprep.subr.bf16.mxu0 %v739_v26 }
  0x44   :  { %579 = vperm.xlu1 %1495, %v536_v34   ;;  %576 = vperm.xlu0 %1494, %v535_v35   ;;  %v1061_v31 = vrot.slane %v1060_v40, 1  ;;  %v441_v35 = vlaneseq }
  0x45   :  { %1464 = vmatpush3.bf16.msra.mxu1 %v739_v26 }
  0x46   :  { %v2032_v41 = vmax.f32 %v1060_v40, %v1061_v31  ;;  %1396 = vmatpush3.bf16.msra.mxu0 %v739_v26  ;;  %1457 = vmatprep.subr.bf16.mxu1 %v738_v48  ;;  %v2104_v40 = vand.u32 127, %v441_v35 }
  0x47   :  { %1397 = vmatprep.subr.bf16.mxu0 %v738_v48 }
  0x48   :  { %2618 = vst [vmem:[#allocation10_spill] sm:$0xff] %v2032_v41  ;;  %505 = vperm.xlu1 %1495, %v1880_v38   ;;  %502 = vperm.xlu0 %1494, %v1889_v43   ;;  %v1063_v49 = vsub.f32 %v1979_v7, %v2032_v41  ;;  %v1064_v51 = vsub.f32 %v1984_v8, %v2032_v41 }
  0x49   :  { %v1065_v54 = vsub.f32 %v1959_v63, %v2032_v41  ;;  %v1066_v38 = vsub.f32 %v1964_v1, %v2032_v41  ;;  %v1067_v43 = vsub.f32 %v1954_v62, %v2032_v41  ;;  %v1068_v0 = vsub.f32 %v1970_v3, %v2032_v41  ;;  %1465 = vmatpush3.bf16.msra.mxu1 %v738_v48 }
  0x4a   :  { %v1069_v59 = vsub.f32 %v1940_v58, %v2032_v41  ;;  %v1070_v60 = vsub.f32 %v1945_v56, %v2032_v41  ;;  %v1071_v61 = vsub.f32 %v1993_v13, %v2032_v41  ;;  %v1072_v63 = vsub.f32 %v1998_v14, %v2032_v41  ;;  %1398 = vmatpush3.bf16.msra.mxu0 %v738_v48 }
  0x4b   :  { %v1073_v62 = vsub.f32 %v1930_v55, %v2032_v41  ;;  %v1074_v1 = vsub.f32 %v1935_v57, %v2032_v41  ;;  %v1075_v58 = vsub.f32 %v1914_v52, %v2032_v41  ;;  %v1076_v56 = vsub.f32 %v1919_v4, %v2032_v41 }
  0x4c   :  { %585 = vperm.xlu1 %1495, %v538_v42   ;;  %582 = vperm.xlu0 %1494, %v537_v46   ;;  %v1077_v3 = vsub.f32 %v1894_v44, %v2032_v41  ;;  %v1079_v5 = vmul.f32 1.442695, %v1063_v49  ;;  %v1078_v6 = vsub.f32 %v1899_v45, %v2032_v41  ;;  %v1081_v55 = vmul.f32 1.442695, %v1064_v51 }
  0x4d   :  { %v1083_v7 = vmul.f32 1.442695, %v1065_v54  ;;  %v1085_v8 = vmul.f32 1.442695, %v1066_v38  ;;  %v1087_v57 = vmul.f32 1.442695, %v1067_v43 }
  0x4e   :  { %1506 = vpow2.f32 %v1079_v5  ;;  %v1089_v52 = vmul.f32 1.442695, %v1068_v0  ;;  %v1091_v4 = vmul.f32 1.442695, %v1069_v59  ;;  %v1093_v9 = vmul.f32 1.442695, %v1070_v60 }
  0x4f   :  { %1508 = vpow2.f32 %v1081_v55  ;;  %v1095_v44 = vmul.f32 1.442695, %v1071_v61  ;;  %v1097_v10 = vmul.f32 1.442695, %v1072_v63  ;;  %v1099_v45 = vmul.f32 1.442695, %v1073_v62 }
  0x50   :  { %1510 = vpow2.f32 %v1083_v7  ;;  %v1101_v13 = vmul.f32 1.442695, %v1074_v1  ;;  %v1103_v14 = vmul.f32 1.442695, %v1075_v58  ;;  %v1105_v16 = vmul.f32 1.442695, %v1076_v56 }
  0x51   :  { %1512 = vpow2.f32 %v1085_v8  ;;  %v1107_v17 = vmul.f32 1.442695, %v1077_v3  ;;  %v1109_v18 = vmul.f32 1.442695, %v1078_v6  ;;  %v2635_v42 = vmov 0 }
  0x52   :  { %1514 = vpow2.f32 %v1087_v57  ;;  %v1676_v38 = vmov 1.0|1.0  }
  0x53   :  { %1516 = vpow2.f32 %v1089_v52 }
  0x54   :  { %1518 = vpow2.f32 %v1091_v4  ;;  %v2651_v4 = vmov 0 }
  0x55   :  { %1520 = vpow2.f32 %v1093_v9  ;;  %v2653_v9 = vmov 0 }
  0x56   :  { %1522 = vpow2.f32 %v1095_v44 }
  0x57   :  { %1524 = vpow2.f32 %v1097_v10 }
  0x58   :  { %1526 = vpow2.f32 %v1099_v45 }
  0x59   :  { %1528 = vpow2.f32 %v1101_v13 }
  0x5a   :  { %1530 = vpow2.f32 %v1103_v14  ;;  %v2655_v14 = vmov 0 }
  0x5b   :  { %v2072_v19 = vpop.eup %1506  ;;  %1532 = vpow2.f32 %v1105_v16  ;;  %v2657_v16 = vmov 0 }
  0x5c   :  { %2619 = vst [vmem:[#allocation11_spill] sm:$0xff] %v2072_v19  ;;  %v2074_v20 = vpop.eup %1508  ;;  %1534 = vpow2.f32 %v1107_v17 }
  0x5d   :  { %2620 = vst [vmem:[#allocation12_spill] sm:$0xff] %v2074_v20  ;;  %v2076_v21 = vpop.eup %1510  ;;  %1536 = vpow2.f32 %v1109_v18 }
  0x5e   :  { %2621 = vst [vmem:[#allocation13_spill] sm:$0xff] %v2076_v21  ;;  %v2078_v22 = vpop.eup %1512 }
  0x5f   :  { %2622 = vst [vmem:[#allocation14_spill] sm:$0xff] %v2078_v22  ;;  %v2080_v23 = vpop.eup %1514 }
  0x60   :  { %2623 = vst [vmem:[#allocation15_spill] sm:$0xff] %v2080_v23  ;;  %v2082_v24 = vpop.eup %1516 }
  0x61   :  { %2624 = vst [vmem:[#allocation16_spill] sm:$0xff] %v2082_v24  ;;  %v2084_v25 = vpop.eup %1518 }
  0x62   :  { %2625 = vst [vmem:[#allocation17_spill] sm:$0xff] %v2084_v25  ;;  %v2086_v27 = vpop.eup %1520 }
  0x63   :  { %2626 = vst [vmem:[#allocation18_spill] sm:$0xff] %v2086_v27  ;;  %v2088_v28 = vpop.eup %1522 }
  0x64   :  { %2627 = vst [vmem:[#allocation19_spill] sm:$0xff] %v2088_v28  ;;  %v2090_v29 = vpop.eup %1524 }
  0x65   :  { %2628 = vst [vmem:[#allocation20_spill] sm:$0xff] %v2090_v29  ;;  %v2092_v30 = vpop.eup %1526 }
  0x66   :  { %2629 = vst [vmem:[#allocation21_spill] sm:$0xff] %v2092_v30  ;;  %v2094_v32 = vpop.eup %1528 }
  0x67   :  { %2630 = vst [vmem:[#allocation22_spill] sm:$0xff] %v2094_v32  ;;  %v2096_v11 = vpop.eup %1530 }
  0x68   :  { %2631 = vst [vmem:[#allocation23_spill] sm:$0xff] %v2096_v11  ;;  %v2098_v15 = vpop.eup %1532 }
  0x69   :  { %2632 = vst [vmem:[#allocation24_spill] sm:$0xff] %v2098_v15  ;;  %v2100_v33 = vpop.eup %1534 }
  0x6a   :  { %2633 = vst [vmem:[#allocation25_spill] sm:$0xff] %v2100_v33  ;;  %v2102_v34 = vpop.eup %1536 }
  0x6b   :  { %2634 = vst [vmem:[#allocation26_spill] sm:$0xff] %v2102_v34 }
  0x8b   :  { %v470_v37 = vpop.permute.xlu1 %469  ;;  %v461_v39 = vpop.permute.xlu0 %460 }
  0x8c   :  { %vm507_vm5 = vcmp.eq.s32.totalorder %v461_v39, %v2104_v40  ;;  %vm510_vm11 = vcmp.eq.s32.totalorder %v470_v37, %v2104_v40 }
  0x8f   :  { %v541_v26 = vpop.permute.xlu1 %540  ;;  %v464_v31 = vpop.permute.xlu0 %463 }
  0x90   :  { %vm587_vm6 = vcmp.eq.s32.totalorder %v541_v26, 1  ;;  %vm508_vm7 = vcmp.eq.s32.totalorder %v464_v31, %v2104_v40 }
  0x91   :  { %vm2108_vm8 = vmand %vm507_vm5, %vm587_vm6 }
  0x92   :  { %v2636_v42 = vsel %vm2108_vm8, 4294967295, %v2635_v42 }
  0x93   :  { %v544_v46 = vpop.permute.xlu1 %543  ;;  %v467_v48 = vpop.permute.xlu0 %466 }
  0x94   :  { %vm588_vm9 = vcmp.eq.s32.totalorder %v544_v46, 1  ;;  %vm509_vm13 = vcmp.eq.s32.totalorder %v467_v48, %v2104_v40 }
  0x95   :  { %vm2112_vm10 = vmand %vm508_vm7, %vm588_vm9 }
  0x96   :  { %vm1283_vm12 = vmpackc.low %vm2112_vm10, %vm2108_vm8 }
  0x97   :  { %v550_v51 = vpop.permute.xlu1 %549  ;;  %v547_v54 = vpop.permute.xlu0 %546  ;;  %1399 = vmatprep.mubr.msk.bf16.mxu0 %vm1283_vm12, %v1676_v38 }
  0x98   :  { %vm590_vm1 = vcmp.eq.s32.totalorder %v550_v51, 1  ;;  %vm589_vm14 = vcmp.eq.s32.totalorder %v547_v54, 1 }
  0x99   :  { %vm2123_vm15 = vmand %vm510_vm11, %vm590_vm1 }
  0x9a   :  { %vm2127_vm2 = vmand %vm509_vm13, %vm589_vm14 }
  0x9b   :  { %vm1285_vm3 = vmpackc.low %vm2123_vm15, %vm2127_vm2  ;;  %v476_v59 = vpop.permute.xlu1 %475  ;;  %v473_v60 = vpop.permute.xlu0 %472 }
  0x9c   :  { %1400 = vmatmul.mubr.msk.bf16.vlgmr.msra.gmra.mxu0 %vm1285_vm3, %v1676_v38  ;;  %vm511_vm4 = vcmp.eq.s32.totalorder %v473_v60, %v2104_v40  ;;  %vm512_vm5 = vcmp.eq.s32.totalorder %v476_v59, %v2104_v40 }
  0x9f   :  { %v556_v61 = vpop.permute.xlu1 %555  ;;  %v553_v63 = vpop.permute.xlu0 %552 }
  0xa0   :  { %vm592_vm6 = vcmp.eq.s32.totalorder %v556_v61, 1  ;;  %vm591_vm7 = vcmp.eq.s32.totalorder %v553_v63, 1  ;;  %v1256_v61 = vld [vmem:[%s2593_s4] ss:$0 sm:$0xff] }
  0xa1   :  { %vm2138_vm9 = vmand %vm511_vm4, %vm591_vm7 }
  0xa2   :  { %vm2142_vm11 = vmand %vm512_vm5, %vm592_vm6 }
  0xa3   :  { %v482_v58 = vpop.permute.xlu1 %481  ;;  %v479_v56 = vpop.permute.xlu0 %478  ;;  %vm1287_vm12 = vmpackc.low %vm2142_vm11, %vm2138_vm9 }
  0xa4   :  { %1403 = vmatprep.mubr.msk.bf16.mxu1 %vm1287_vm12, %v1676_v38  ;;  %vm514_vm13 = vcmp.eq.s32.totalorder %v482_v58, %v2104_v40  ;;  %vm513_vm1 = vcmp.eq.s32.totalorder %v479_v56, %v2104_v40 }
  0xa7   :  { %v562_v3 = vpop.permute.xlu1 %561  ;;  %v559_v5 = vpop.permute.xlu0 %558 }
  0xa8   :  { %vm594_vm14 = vcmp.eq.s32.totalorder %v562_v3, 1  ;;  %vm593_vm3 = vcmp.eq.s32.totalorder %v559_v5, 1 }
  0xa9   :  { %vm2153_vm4 = vmand %vm514_vm13, %vm594_vm14 }
  0xaa   :  { %vm2157_vm5 = vmand %vm513_vm1, %vm593_vm3 }
  0xab   :  { %vm1289_vm6 = vmpackc.low %vm2153_vm4, %vm2157_vm5  ;;  %v488_v7 = vpop.permute.xlu1 %487  ;;  %v485_v8 = vpop.permute.xlu0 %484 }
  0xac   :  { %1404 = vmatmul.mubr.msk.bf16.vlgmr.msra.gmra.mxu1 %vm1289_vm6, %v1676_v38  ;;  %vm516_vm7 = vcmp.eq.s32.totalorder %v488_v7, %v2104_v40  ;;  %vm515_vm12 = vcmp.eq.s32.totalorder %v485_v8, %v2104_v40 }
  0xaf   :  { %v568_v57 = vpop.permute.xlu1 %567  ;;  %v565_v52 = vpop.permute.xlu0 %564 }
  0xb0   :  { %vm596_vm13 = vcmp.eq.s32.totalorder %v568_v57, 1  ;;  %vm595_vm1 = vcmp.eq.s32.totalorder %v565_v52, 1 }
  0xb1   :  { %vm2168_vm14 = vmand %vm516_vm7, %vm596_vm13 }
  0xb2   :  { %v2652_v4 = vsel %vm2168_vm14, 4294967295, %v2651_v4  ;;  %vm2172_vm3 = vmand %vm515_vm12, %vm595_vm1 }
  0xb3   :  { %v2654_v9 = vsel %vm2172_vm3, 4294967295, %v2653_v9  ;;  %vm1291_vm6 = vmpackc.low %vm2168_vm14, %vm2172_vm3  ;;  %v494_v44 = vpop.permute.xlu1 %493  ;;  %v491_v10 = vpop.permute.xlu0 %490 }
  0xb4   :  { %1407 = vmatprep.mubr.msk.bf16.mxu1 %vm1291_vm6, %v1676_v38  ;;  %vm518_vm0 = vcmp.eq.s32.totalorder %v494_v44, %v2104_v40  ;;  %vm517_vm7 = vcmp.eq.s32.totalorder %v491_v10, %v2104_v40 }
  0xb7   :  { %v574_v45 = vpop.permute.xlu1 %573  ;;  %v571_v13 = vpop.permute.xlu0 %570 }
  0xb8   :  { %vm598_vm13 = vcmp.eq.s32.totalorder %v574_v45, 1  ;;  %vm597_vm12 = vcmp.eq.s32.totalorder %v571_v13, 1 }
  0xb9   :  { %vm2183_vm1 = vmand %vm518_vm0, %vm598_vm13 }
  0xba   :  { %v2656_v14 = vsel %vm2183_vm1, 4294967295, %v2655_v14  ;;  %vm2187_vm8 = vmand %vm517_vm7, %vm597_vm12 }
  0xbb   :  { %v2658_v16 = vsel %vm2187_vm8, 4294967295, %v2657_v16  ;;  %vm1293_vm6 = vmpackc.low %vm2183_vm1, %vm2187_vm8  ;;  %v500_v17 = vpop.permute.xlu1 %499  ;;  %v497_v18 = vpop.permute.xlu0 %496 }
  0xbc   :  { %1408 = vmatmul.mubr.msk.bf16.gmra.mxu1 %vm1293_vm6, %v1676_v38  ;;  %vm520_vm14 = vcmp.eq.s32.totalorder %v500_v17, %v2104_v40  ;;  %vm519_vm0 = vcmp.eq.s32.totalorder %v497_v18, %v2104_v40 }
  0xbf   :  { %v580_v35 = vpop.permute.xlu1 %579  ;;  %v577_v37 = vpop.permute.xlu0 %576 }
  0xc0   :  { %vm600_vm13 = vcmp.eq.s32.totalorder %v580_v35, 1  ;;  %vm599_vm7 = vcmp.eq.s32.totalorder %v577_v37, 1 }
  0xc1   :  { %vm2198_vm12 = vmand %vm520_vm14, %vm600_vm13 }
  0xc2   :  { %vm2202_vm3 = vmand %vm519_vm0, %vm599_vm7 }
  0xc3   :  { %vm1295_vm6 = vmpackc.low %vm2198_vm12, %vm2202_vm3  ;;  %v506_v31 = vpop.permute.xlu1 %505  ;;  %v503_v46 = vpop.permute.xlu0 %502 }
  0xc4   :  { %1411 = vmatprep.mubr.msk.bf16.mxu1 %vm1295_vm6, %v1676_v38  ;;  %vm522_vm1 = vcmp.eq.s32.totalorder %v506_v31, %v2104_v40  ;;  %vm521_vm14 = vcmp.eq.s32.totalorder %v503_v46, %v2104_v40 }
  0xc7   :  { %v586_v48 = vpop.permute.xlu1 %585  ;;  %v583_v51 = vpop.permute.xlu0 %582 }
  0xc8   :  { %vm602_vm13 = vcmp.eq.s32.totalorder %v586_v48, 1  ;;  %vm601_vm0 = vcmp.eq.s32.totalorder %v583_v51, 1 }
  0xc9   :  { %vm2213_vm7 = vmand %vm522_vm1, %vm602_vm13  ;;  %vm2673_vm1 = vcmask 7168  }
  0xca   :  { %vm2217_vm8 = vmand %vm521_vm14, %vm601_vm0 }
  0xcb   :  { %vm1297_vm6 = vmpackc.low %vm2213_vm7, %vm2217_vm8 }
  0xcc   :  { %1412 = vmatmul.mubr.msk.bf16.gmra.mxu1 %vm1297_vm6, %v1676_v38  ;;  %vm2674_vm14 = vmmov %vm2673_vm1 }
  0xcd   :  { %vm2675_vm13 = vmmov %vm2673_vm1 }
  0xd9   :  { %v1369_v60 = vpop.f32.mrf.mxu0 }
  0xda   :  { %v2232_v5 = vadd.f32 %v1369_v60, %v1256_v61 }
  0xdb   :  { %v167_v63 = vpop.f32.mrf.mxu0 }
  0xdc   :  { %v2229_v58 = vadd.f32 %v1256_v61, %v167_v63 }
  0xdd   :  { %v1370_v56 = vpop.f32.mrf.mxu0 }
  0xde   :  { %230 = vmax.xlane.f32.xlu0 %v2229_v58  ;;  %v2238_v57 = vadd.f32 %v1370_v56, %v1256_v61 }
  0xdf   :  { %v170_v3 = vpop.f32.mrf.mxu0 }
  0xe0   :  { %v2234_v7 = vadd.f32 %v1256_v61, %v170_v3 }
  0xe1   :  { %v1373_v8 = vpop.f32.mrf.mxu0 }
  0xe2   :  { %232 = vmax.xlane.f32.xlu1 %v2234_v7  ;;  %234 = vmax.xlane.f32.xlu0 %v2232_v5  ;;  %v2242_v10 = vadd.f32 %v1373_v8, %v1256_v61 }
  0xe3   :  { %v183_v38 = vpop.f32.mrf.mxu0 }
  0xe4   :  { %v2240_v52 = vadd.f32 %v1256_v61, %v183_v38 }
  0xe5   :  { %v1374_v44 = vpop.f32.mrf.mxu0 }
  0xe6   :  { %238 = vmax.xlane.f32.xlu1 %v2240_v52  ;;  %236 = vmax.xlane.f32.xlu0 %v2238_v57  ;;  %v2250_v35 = vadd.f32 %v1374_v44, %v1256_v61 }
  0xe7   :  { %v186_v45 = vpop.f32.mrf.mxu0 }
  0xe8   :  { %v2246_v13 = vadd.f32 %v1256_v61, %v186_v45 }
  0xe9   :  { %v1377_v17 = vpop.f32.mrf.mxu0 }
  0xea   :  { %242 = vmax.xlane.f32.xlu1 %v2242_v10  ;;  %240 = vmax.xlane.f32.xlu0 %v2246_v13  ;;  %v2254_v46 = vadd.f32 %v1377_v17, %v1256_v61 }
  0xeb   :  { %v199_v18 = vpop.f32.mrf.mxu0 }
  0xec   :  { %v2252_v37 = vadd.f32 %v1256_v61, %v199_v18  ;;  %2667 = vst [vmem:[#allocation27_spill] sm:$0xff] %v2254_v46  ;;  %v1017_v18 = vsel %vm2673_vm1, %v1874_v36, 0.0 }
  0xed   :  { %v1378_v31 = vpop.f32.mrf.mxu0 }
  0xee   :  { %246 = vmax.xlane.f32.xlu1 %v2252_v37  ;;  %244 = vmax.xlane.f32.xlu0 %v2250_v35  ;;  %v2260_v63 = vadd.f32 %v1378_v31, %v1256_v61  ;;  %v1019_v31 = vsel %vm2674_vm14, %v1921_v53, 0.0 }
  0xef   :  { %v202_v48 = vpop.f32.mrf.mxu0 }
  0xf0   :  { %v2258_v51 = vadd.f32 %v1256_v61, %v202_v48  ;;  %2668 = vst [vmem:[#allocation28_spill] sm:$0xff] %v2260_v63  ;;  %v1018_v48 = vadd.f32 %v1017_v18, %v1908_v50 }
  0xf1   :  { %v1381_v60 = vpop.f32.mrf.mxu0 }
  0xf2   :  { %250 = vmax.xlane.f32.xlu1 %v2254_v46  ;;  %248 = vmax.xlane.f32.xlu0 %v2258_v51  ;;  %v2266_v38 = vadd.f32 %v1381_v60, %v1256_v61  ;;  %v1020_v60 = vadd.f32 %v1019_v31, %v1018_v48 }
  0xf3   :  { %v215_v56 = vpop.f32.mrf.mxu0 }
  0xf4   :  { %v2264_v3 = vadd.f32 %v1256_v61, %v215_v56  ;;  %2670 = vst [vmem:[#allocation30_spill] sm:$0xff] %v2266_v38  ;;  %v1021_v56 = vsel %vm2675_vm13, %v1902_v47, 0.0 }
  0xf5   :  { %v1382_v8 = vpop.f32.mrf.mxu0 }
  0xf6   :  { %2669 = vst [vmem:[#allocation29_spill] sm:$0xff] %v2264_v3  ;;  %254 = vmax.xlane.f32.xlu1 %v2264_v3  ;;  %252 = vmax.xlane.f32.xlu0 %v2260_v63  ;;  %v2272_v17 = vadd.f32 %v1382_v8, %v1256_v61 }
  0xf7   :  { %v218_v44 = vpop.f32.mrf.mxu0 }
  0xf8   :  { %v2270_v45 = vadd.f32 %v1256_v61, %v218_v44  ;;  %2672 = vst [vmem:[#allocation32_spill] sm:$0xff] %v2272_v17  ;;  %v2284_v61 = vadd.f32 %v1021_v56, %v1020_v60 }
  0xfa   :  { %2671 = vst [vmem:[#allocation31_spill] sm:$0xff] %v2270_v45  ;;  %258 = vmax.xlane.f32.xlu1 %v2266_v38  ;;  %256 = vmax.xlane.f32.xlu0 %v2270_v45  ;;  %v1466_v49 = vtrunc.f32 %v2284_v61 }
  0xfe   :  { %260 = vmax.xlane.f32.xlu0 %v2272_v17 }
 0x167   :  { %v2286_v8 = vpop.xlane.xlu0 %230 }
 0x168   :  { %v262_v12 = vsub.f32 %v2229_v58, %v2286_v8 }
 0x16a   :  { %v278_v48 = vmul.f32 1.442695, %v262_v12 }
 0x16b   :  { %v2288_v44 = vpop.xlane.xlu1 %232  ;;  %v2294_v41 = vpop.xlane.xlu0 %234 }
 0x16c   :  { %v263_v36 = vsub.f32 %v2234_v7, %v2288_v44  ;;  %v264_v50 = vsub.f32 %v2232_v5, %v2294_v41  ;;  %v2298_v18 = vpop.f32.mrf.mxu1 }
 0x16e   :  { %v280_v53 = vmul.f32 1.442695, %v263_v36  ;;  %v282_v47 = vmul.f32 1.442695, %v264_v50  ;;  %v2308_v19 = vpop.f32.mrf.mxu1 }
 0x16f   :  { %v2300_v31 = vpop.xlane.xlu1 %238  ;;  %v2304_v56 = vpop.xlane.xlu0 %236 }
 0x170   :  { %1538 = vpow2.f32 %v280_v53  ;;  %v266_v60 = vsub.f32 %v2240_v52, %v2300_v31  ;;  %v265_v2 = vsub.f32 %v2238_v57, %v2304_v56 }
 0x171   :  { %1540 = vpow2.f32 %v282_v47  ;;  %v2318_v47 = vpop.f32.mrf.mxu1 }
 0x172   :  { %v284_v20 = vmul.f32 1.442695, %v265_v2  ;;  %1542 = vpow2.f32 %v278_v48  ;;  %v286_v50 = vmul.f32 1.442695, %v266_v60 }
 0x173   :  { %v2310_v36 = vpop.xlane.xlu1 %242  ;;  %v2314_v53 = vpop.xlane.xlu0 %240 }
 0x174   :  { %v268_v12 = vsub.f32 %v2242_v10, %v2310_v36  ;;  %1544 = vpow2.f32 %v284_v20  ;;  %v267_v21 = vsub.f32 %v2246_v13, %v2314_v53  ;;  %v2328_v20 = vpop.f32.mrf.mxu1 }
 0x175   :  { %1546 = vpow2.f32 %v286_v50 }
 0x176   :  { %v288_v22 = vmul.f32 1.442695, %v267_v21  ;;  %v290_v2 = vmul.f32 1.442695, %v268_v12 }
 0x177   :  { %v2320_v23 = vpop.xlane.xlu1 %246  ;;  %v2324_v60 = vpop.xlane.xlu0 %244 }
 0x178   :  { %v270_v48 = vsub.f32 %v2252_v37, %v2320_v23  ;;  %1548 = vpow2.f32 %v288_v22  ;;  %v269_v24 = vsub.f32 %v2250_v35, %v2324_v60 }
 0x179   :  { %1550 = vpow2.f32 %v290_v2 }
 0x17a   :  { %v292_v25 = vmul.f32 1.442695, %v269_v24  ;;  %v294_v21 = vmul.f32 1.442695, %v270_v48 }
 0x17b   :  { %v2330_v27 = vpop.xlane.xlu1 %250  ;;  %v2334_v12 = vpop.xlane.xlu0 %248 }
 0x17c   :  { %v272_v50 = vsub.f32 %v2254_v46, %v2330_v27  ;;  %1552 = vpow2.f32 %v292_v25  ;;  %v2336_v29 = vpop.f32.mrf.mxu1  ;;  %v271_v22 = vsub.f32 %v2258_v51, %v2334_v12 }
 0x17d   :  { %v1539_v28 = vpop.eup %1538  ;;  %1554 = vpow2.f32 %v294_v21 }
 0x17e   :  { %v1541_v30 = vpop.eup %1540  ;;  %312 = vadd.xlane.f32.xlu0 %v1539_v28  ;;  %v296_v32 = vmul.f32 1.442695, %v271_v22  ;;  %v298_v2 = vmul.f32 1.442695, %v272_v50  ;;  %v2346_v25 = vpop.f32.mrf.mxu1 }
 0x17f   :  { %314 = vadd.xlane.f32.xlu1 %v1541_v30  ;;  %v2340_v24 = vpop.xlane.xlu1 %254  ;;  %v2344_v11 = vpop.xlane.xlu0 %252 }
 0x180   :  { %2676 = vst [vmem:[#allocation33_spill] sm:$0xff] %v2340_v24  ;;  %v274_v48 = vsub.f32 %v2264_v3, %v2340_v24  ;;  %v1543_v15 = vpop.eup %1542  ;;  %1556 = vpow2.f32 %v296_v32  ;;  %v273_v33 = vsub.f32 %v2260_v63, %v2344_v11  ;;  %v2356_v32 = vpop.f32.mrf.mxu1 }
 0x181   :  { %v1545_v34 = vpop.eup %1544  ;;  %1558 = vpow2.f32 %v298_v2 }
 0x182   :  { %v300_v28 = vmul.f32 1.442695, %v273_v33  ;;  %316 = vadd.xlane.f32.xlu0 %v1545_v34  ;;  %v302_v21 = vmul.f32 1.442695, %v274_v48  ;;  %v1547_v3 = vpop.eup %1546  ;;  %v2362_v48 = vpop.f32.mrf.mxu1 }
 0x183   :  { %310 = vadd.xlane.f32.xlu1 %v1543_v15  ;;  %v2350_v30 = vpop.xlane.xlu1 %258  ;;  %v2354_v22 = vpop.xlane.xlu0 %256 }
 0x184   :  { %2677 = vst [vmem:[#allocation34_spill] sm:$0xff] %v2350_v30  ;;  %v276_v50 = vsub.f32 %v2266_v38, %v2350_v30  ;;  %1560 = vpow2.f32 %v300_v28  ;;  %v275_v24 = vsub.f32 %v2270_v45, %v2354_v22 }
 0x185   :  { %v1549_v63 = vpop.eup %1548  ;;  %1562 = vpow2.f32 %v302_v21 }
 0x186   :  { %v304_v33 = vmul.f32 1.442695, %v275_v24  ;;  %320 = vadd.xlane.f32.xlu0 %v1549_v63  ;;  %v306_v15 = vmul.f32 1.442695, %v276_v50  ;;  %v1551_v2 = vpop.eup %1550 }
 0x187   :  { %318 = vadd.xlane.f32.xlu1 %v1547_v3  ;;  %v2360_v34 = vpop.xlane.xlu0 %260 }
 0x188   :  { %2678 = vst [vmem:[#allocation35_spill] sm:$0xff] %v2360_v34  ;;  %1564 = vpow2.f32 %v304_v33  ;;  %v277_v38 = vsub.f32 %v2272_v17, %v2360_v34  ;;  %v1401_v34 = vpop.f32.mrf.mxu0 }
 0x189   :  { %v1553_v30 = vpop.eup %1552  ;;  %1566 = vpow2.f32 %v306_v15  ;;  %v2679_v15 = vmov 0.0  }
 0x18a   :  { %v308_v28 = vmul.f32 1.442695, %v277_v38  ;;  %324 = vadd.xlane.f32.xlu0 %v1553_v30  ;;  %v1555_v3 = vpop.eup %1554  ;;  %v780_v30 = vpop.f32.mrf.mxu0  ;;  %v2390_v43 = vsel %vm2142_vm11, 1.0, %v2679_v15  ;;  %v2397_v62 = vsel %vm2157_vm5, 1.0, %v2679_v15  ;;  %v2404_v1 = vsel %vm2127_vm2, 1.0, %v2679_v15 }
 0x18b   :  { %322 = vadd.xlane.f32.xlu1 %v1551_v2  ;;  %v847_v61 = vmul.f32 %v2397_v62, %v2328_v20  ;;  %vm2682_vm2 = vnez %v2658_v16 }
 0x18c   :  { %v2366_v46 = vpop.f32.mrf.mxu1  ;;  %1568 = vpow2.f32 %v308_v28  ;;  %v2371_v28 = vsel %vm2112_vm10, 1.0, %v2679_v15  ;;  %vm2680_vm10 = vnez %v2654_v9 }
 0x18d   :  { %v1557_v24 = vpop.eup %1556  ;;  %v2417_v20 = vsel %vm2680_vm10, 1.0, %v2679_v15 }
 0x18e   :  { %v828_v63 = vpop.f32.mrf.mxu1  ;;  %328 = vadd.xlane.f32.xlu0 %v1557_v24  ;;  %v1559_v50 = vpop.eup %1558  ;;  %v849_v0 = vmul.f32 %v2318_v47, %v2417_v20 }
 0x18f   :  { %326 = vadd.xlane.f32.xlu1 %v1555_v3  ;;  %v842_v3 = vmul.f32 %v2371_v28, %v780_v30  ;;  %v1402_v24 = vpop.f32.mrf.mxu0 }
 0x190   :  { %v1414_v21 = vpop.f32.mrf.mxu1 }
 0x191   :  { %v1561_v45 = vpop.eup %1560  ;;  %v2383_v21 = vsel %vm2138_vm9, 1.0, %v2679_v15  ;;  %vm2683_vm9 = vnez %v2656_v14 }
 0x192   :  { %332 = vadd.xlane.f32.xlu0 %v1561_v45  ;;  %v1563_v33 = vpop.eup %1562  ;;  %v2377_v45 = vsel %vm2123_vm15, 1.0, %v2679_v15  ;;  %vm2681_vm15 = vnez %v2652_v4  ;;  %v2438_v47 = vsel %vm2683_vm9, 1.0, %v2679_v15 }
 0x193   :  { %330 = vadd.xlane.f32.xlu1 %v1559_v50  ;;  %v845_v50 = vmul.f32 %v1402_v24, %v2383_v21  ;;  %v2424_v30 = vsel %vm2681_vm15, 1.0, %v2679_v15  ;;  %v852_v4 = vmul.f32 %v2336_v29, %v2438_v47  ;;  %v2458_v29 = vsel %vm2217_vm8, 1.0, %v2679_v15 }
 0x194   :  { %v850_v6 = vmul.f32 %v2424_v30, %v2346_v25  ;;  %v2445_v25 = vsel %vm2202_vm3, 1.0, %v2679_v15  ;;  %vm2684_vm8 = vnez %v2636_v42 }
 0x195   :  { %v1565_v17 = vpop.eup %1564  ;;  %v853_v16 = vmul.f32 %v2356_v32, %v2445_v25  ;;  %v2464_v32 = vsel %vm2213_vm7, 1.0, %v2679_v15 }
 0x196   :  { %336 = vadd.xlane.f32.xlu0 %v1565_v17  ;;  %v1567_v38 = vpop.eup %1566  ;;  %v844_v17 = vmul.f32 %v1401_v34, %v2377_v45  ;;  %v846_v34 = vmul.f32 %v2390_v43, %v2308_v19  ;;  %v2410_v19 = vsel %vm2153_vm4, 1.0, %v2679_v15  ;;  %v856_v39 = vmul.f32 %v2366_v46, %v2464_v32 }
 0x197   :  { %334 = vadd.xlane.f32.xlu1 %v1563_v33  ;;  %v1467_v33 = vcvt.f32.s32 %v1466_v49  ;;  %v848_v55 = vmul.f32 %v2298_v18, %v2410_v19  ;;  %v2431_v18 = vsel %vm2682_vm2, 1.0, %v2679_v15 }
 0x198   :  { %v851_v9 = vmul.f32 %v2431_v18, %v2362_v48  ;;  %v2452_v48 = vsel %vm2198_vm12, 1.0, %v2679_v15 }
 0x199   :  { %v1569_v2 = vpop.eup %1568  ;;  %v854_v14 = vmul.f32 %v2452_v48, %v828_v63 }
 0x19a   :  { %340 = vadd.xlane.f32.xlu0 %v1569_v2 }
 0x19b   :  { %338 = vadd.xlane.f32.xlu1 %v1567_v38  ;;  %v783_v38 = vpop.f32.mrf.mxu0 }
 0x19c   :  { %v843_v2 = vmul.f32 %v2404_v1, %v783_v38 }
 0x19e   :  { %857 = vadd.xlane.f32.xlu0 %v842_v3  ;;  %v831_v3 = vpop.f32.mrf.mxu1 }
 0x19f   :  { %v855_v26 = vmul.f32 %v2458_v29, %v831_v3 }
 0x1a2   :  { %861 = vadd.xlane.f32.xlu0 %v844_v17 }
 0x1a6   :  { %863 = vadd.xlane.f32.xlu0 %v845_v50 }
 0x1aa   :  { %865 = vadd.xlane.f32.xlu0 %v846_v34 }
 0x1ac   :  { %1025 = vperm.xlu1 %1495, %v1467_v33  }
 0x1ae   :  { %867 = vadd.xlane.f32.xlu0 %v847_v61 }
 0x1d0   :  { %859 = vadd.xlane.f32.xlu1 %v843_v2 }
 0x1d4   :  { %869 = vadd.xlane.f32.xlu1 %v848_v55 }
 0x1d8   :  { %871 = vadd.xlane.f32.xlu1 %v849_v0 }
 0x1dc   :  { %873 = vadd.xlane.f32.xlu1 %v850_v6 }
 0x1e0   :  { %875 = vadd.xlane.f32.xlu1 %v851_v9 }
 0x1e4   :  { %877 = vadd.xlane.f32.xlu1 %v852_v4 }
 0x1e8   :  { %879 = vadd.xlane.f32.xlu1 %v853_v16 }
 0x1ec   :  { %881 = vadd.xlane.f32.xlu1 %v854_v14 }
 0x1f0   :  { %883 = vadd.xlane.f32.xlu1 %v855_v26 }
 0x1f4   :  { %885 = vadd.xlane.f32.xlu1 %v856_v39 }
 0x207   :  { %v313_v63 = vpop.xlane.xlu0 %312 }
 0x208   :  { %v315_v17 = vpop.xlane.xlu1 %314  ;;  %1570 = vlog2.f32 %v313_v63 }
 0x209   :  { %1572 = vlog2.f32 %v315_v17 }
 0x20b   :  { %v317_v59 = vpop.xlane.xlu0 %316 }
 0x20c   :  { %v311_v24 = vpop.xlane.xlu1 %310 }
 0x20d   :  { %1574 = vlog2.f32 %v311_v24 }
 0x20e   :  { %1576 = vlog2.f32 %v317_v59 }
 0x20f   :  { %v321_v50 = vpop.xlane.xlu0 %320 }
 0x210   :  { %v319_v49 = vpop.xlane.xlu1 %318 }
 0x211   :  { %1578 = vlog2.f32 %v319_v49 }
 0x212   :  { %1580 = vlog2.f32 %v321_v50 }
 0x213   :  { %v325_v54 = vpop.xlane.xlu0 %324 }
 0x214   :  { %v323_v33 = vpop.xlane.xlu1 %322 }
 0x215   :  { %v1571_v34 = vpop.eup %1570  ;;  %1582 = vlog2.f32 %v323_v33 }
 0x216   :  { %v1573_v61 = vpop.eup %1572  ;;  %v345_v38 = vmul.f32 0.6931472, %v1571_v34  ;;  %1584 = vlog2.f32 %v325_v54 }
 0x217   :  { %v347_v46 = vmul.f32 0.6931472, %v1573_v61  ;;  %v329_v55 = vpop.xlane.xlu0 %328 }
 0x218   :  { %v327_v2 = vpop.xlane.xlu1 %326  ;;  %v375_v0 = vadd.f32 %v345_v38, %v2288_v44 }
 0x219   :  { %1586 = vlog2.f32 %v327_v2  ;;  %v376_v6 = vadd.f32 %v347_v46, %v2294_v41 }
 0x21a   :  { %v1575_v9 = vpop.eup %1574  ;;  %1588 = vlog2.f32 %v329_v55  ;;  %v391_v4 = vsub.f32 %v2234_v7, %v375_v0 }
 0x21b   :  { %v1577_v16 = vpop.eup %1576  ;;  %v343_v14 = vmul.f32 0.6931472, %v1575_v9  ;;  %v392_v3 = vsub.f32 %v2232_v5, %v376_v6  ;;  %v333_v63 = vpop.xlane.xlu0 %332 }
 0x21c   :  { %v349_v26 = vmul.f32 0.6931472, %v1577_v16  ;;  %v331_v39 = vpop.xlane.xlu1 %330  ;;  %407 = vst [vmem:[#allocation2 + $0x8] sm:$0xff] %v391_v4 }
 0x21d   :  { %v374_v17 = vadd.f32 %v343_v14, %v2286_v8  ;;  %1590 = vlog2.f32 %v331_v39  ;;  %408 = vst [vmem:[#allocation2 + $0x10] sm:$0xff] %v392_v3  ;;  %v653_v44 = vmul.f32 %v2404_v1, %v392_v3  ;;  %v2479_v8 = vld [vmem:[%s2595_s6] ss:$0 sm:$0xff]  ;;  %v2484_v1 = vsel %vm2684_vm8, 1.0, %v2679_v15 }
 0x21e   :  { %v1579_v24 = vpop.eup %1578  ;;  %1592 = vlog2.f32 %v333_v63  ;;  %v377_v41 = vadd.f32 %v349_v26, %v2304_v56 }
 0x21f   :  { %v1581_v59 = vpop.eup %1580  ;;  %v351_v7 = vmul.f32 0.6931472, %v1579_v24  ;;  %671 = vadd.xlane.f32.xlu0 %v653_v44  ;;  %v390_v49 = vsub.f32 %v2229_v58, %v374_v17  ;;  %v337_v33 = vpop.xlane.xlu0 %336 }
 0x220   :  { %v353_v5 = vmul.f32 0.6931472, %v1581_v59  ;;  %v335_v50 = vpop.xlane.xlu1 %334  ;;  %v393_v56 = vsub.f32 %v2238_v57, %v377_v41 }
 0x221   :  { %1594 = vlog2.f32 %v335_v50  ;;  %406 = vst [vmem:[#allocation2] sm:$0xff] %v390_v49  ;;  %v651_v54 = vmul.f32 %v2484_v1, %v390_v49  ;;  %v2489_v58 = vadd.f32 %v2479_v8, %v390_v49   ;;  %v378_v34 = vadd.f32 %v351_v7, %v2300_v31  ;;  %v2685_v49 = vld [vmem:[#allocation27_spill] sm:$0xff] }
 0x222   :  { %v1583_v61 = vpop.eup %1582  ;;  %1596 = vlog2.f32 %v337_v33  ;;  %409 = vst [vmem:[#allocation2 + $0x18] sm:$0xff] %v393_v56  ;;  %v379_v38 = vadd.f32 %v353_v5, %v2314_v53  ;;  %v654_v9 = vmul.f32 %v2377_v45, %v393_v56  ;;  %v2505_v45 = vld [vmem:[%s2596_s7] ss:$0 sm:$0xff]  ;;  %v2687_v56 = vld [vmem:[#allocation33_spill] sm:$0xff]  ;;  %s2548_s7 = smov 1  }
 0x223   :  { %v1585_v46 = vpop.eup %1584  ;;  %v355_v42 = vmul.f32 0.6931472, %v1583_v61  ;;  %667 = vadd.xlane.f32.xlu0 %v651_v54  ;;  %v394_v2 = vsub.f32 %v2240_v52, %v378_v34  ;;  %v341_v0 = vpop.xlane.xlu0 %340  ;;  %v2688_v61 = vld [vmem:[#allocation29_spill] sm:$0xff] }
 0x224   :  { %v357_v57 = vmul.f32 0.6931472, %v1585_v46  ;;  %v339_v55 = vpop.xlane.xlu1 %338  ;;  %v2495_v6 = vsub.f32 %v2246_v13, %v379_v38 }
 0x225   :  { %1598 = vlog2.f32 %v339_v55  ;;  %v380_v31 = vadd.f32 %v355_v42, %v2310_v36  ;;  %410 = vst [vmem:[#allocation2 + $0x20] sm:$0xff] %v394_v2  ;;  %v655_v54 = vmul.f32 %v2383_v21, %v394_v2  ;;  %v2689_v42 = vld [vmem:[#allocation31_spill] sm:$0xff]  ;;  %v2690_v55 = vld [vmem:[#allocation34_spill] sm:$0xff] }
 0x226   :  { %v1587_v16 = vpop.eup %1586  ;;  %1600 = vlog2.f32 %v341_v0  ;;  %v381_v53 = vadd.f32 %v357_v57, %v2324_v60  ;;  %411 = vst [vmem:[#allocation2 + $0x28] sm:$0xff] %v2495_v6  ;;  %v652_v60 = vmul.f32 %v2371_v28, %v391_v4  ;;  %v2692_v2 = vld [vmem:[#allocation30_spill] sm:$0xff] }
 0x227   :  { %v1589_v14 = vpop.eup %1588  ;;  %v359_v52 = vmul.f32 0.6931472, %v1587_v16  ;;  %673 = vadd.xlane.f32.xlu0 %v654_v9  ;;  %v396_v3 = vsub.f32 %v2242_v10, %v380_v31  ;;  %v2691_v31 = vld [vmem:[#allocation35_spill] sm:$0xff]  ;;  %v2693_v16 = vld [vmem:[#allocation32_spill] sm:$0xff] }
 0x228   :  { %v361_v26 = vmul.f32 0.6931472, %v1589_v14  ;;  %v1026_v13 = vpop.permute.xlu1 %1025  ;;  %v397_v36 = vsub.f32 %v2250_v35, %v381_v53  ;;  %v656_v14 = vmul.f32 %v2390_v43, %v2495_v6 }
 0x229   :  { %vm1027_vm11 = vcmp.eq.s32.totalorder %v1026_v13, %v2104_v40  ;;  %412 = vst [vmem:[#allocation2 + $0x30] sm:$0xff] %v396_v3  ;;  %v382_v39 = vadd.f32 %v359_v52, %v2320_v23  ;;  %v657_v28 = vmul.f32 %v2397_v62, %v396_v3 }
 0x22a   :  { %v1591_v63 = vpop.eup %1590  ;;  %v383_v17 = vadd.f32 %v361_v26, %v2334_v12  ;;  %v1317_v10 = vsel %vm1027_vm11, 1.0, %v2679_v15  ;;  %413 = vst [vmem:[#allocation2 + $0x38] sm:$0xff] %v397_v36  ;;  %v658_v9 = vmul.f32 %v2410_v19, %v397_v36 }
 0x22b   :  { %v1593_v44 = vpop.eup %1592  ;;  %v363_v24 = vmul.f32 0.6931472, %v1591_v63  ;;  %669 = vadd.xlane.f32.xlu0 %v652_v60  ;;  %v1036_v41 = vmul.f32 %v2505_v45, %v1317_v10  ;;  %v398_v35 = vsub.f32 %v2252_v37, %v382_v39  ;;  %v2686_v37 = vld [vmem:[#allocation28_spill] sm:$0xff] }
 0x22c   :  { %v365_v59 = vmul.f32 0.6931472, %v1593_v44  ;;  %v399_v40 = vsub.f32 %v2258_v51, %v383_v17 }
 0x22d   :  { %1037 = vadd.xlane.f32.xlu1 %v1036_v41  ;;  %v384_v23 = vadd.f32 %v363_v24, %v2330_v27  ;;  %414 = vst [vmem:[#allocation2 + $0x40] sm:$0xff] %v398_v35  ;;  %v659_v19 = vmul.f32 %v2417_v20, %v398_v35  ;;  %v907_v20 = vmul.f32 %v2479_v8, %v2484_v1 }
 0x22e   :  { %v1595_v12 = vpop.eup %1594  ;;  %v385_v15 = vadd.f32 %v365_v59, %v2344_v11  ;;  %415 = vst [vmem:[#allocation2 + $0x48] sm:$0xff] %v399_v40  ;;  %v660_v26 = vmul.f32 %v2424_v30, %v399_v40 }
 0x22f   :  { %v1597_v4 = vpop.eup %1596  ;;  %v367_v7 = vmul.f32 0.6931472, %v1595_v12  ;;  %679 = vadd.xlane.f32.xlu0 %v657_v28  ;;  %v400_v5 = vsub.f32 %v2685_v49, %v384_v23 }
 0x230   :  { %v369_v50 = vmul.f32 0.6931472, %v1597_v4  ;;  %v401_v33 = vsub.f32 %v2686_v37, %v385_v15 }
 0x231   :  { %v386_v51 = vadd.f32 %v367_v7, %v2687_v56  ;;  %416 = vst [vmem:[#allocation2 + $0x50] sm:$0xff] %v400_v5  ;;  %v661_v52 = vmul.f32 %v2431_v18, %v400_v5 }
 0x232   :  { %v1599_v62 = vpop.eup %1598  ;;  %v387_v27 = vadd.f32 %v369_v50, %v2354_v22  ;;  %417 = vst [vmem:[#allocation2 + $0x58] sm:$0xff] %v401_v33  ;;  %v662_v3 = vmul.f32 %v2438_v47, %v401_v33  ;;  %v858_v47 = vpop.xlane.xlu0 %857 }
 0x233   :  { %v1601_v34 = vpop.eup %1600  ;;  %v371_v11 = vmul.f32 0.6931472, %v1599_v62  ;;  %675 = vadd.xlane.f32.xlu0 %v655_v54  ;;  %v402_v38 = vsub.f32 %v2688_v61, %v386_v51 }
 0x234   :  { %v373_v46 = vmul.f32 0.6931472, %v1601_v34  ;;  %v403_v57 = vsub.f32 %v2689_v42, %v387_v27 }
 0x235   :  { %v388_v0 = vadd.f32 %v371_v11, %v2690_v55  ;;  %418 = vst [vmem:[#allocation2 + $0x60] sm:$0xff] %v402_v38  ;;  %v663_v43 = vmul.f32 %v2445_v25, %v402_v38 }
 0x236   :  { %v389_v21 = vadd.f32 %v373_v46, %v2691_v31  ;;  %419 = vst [vmem:[#allocation2 + $0x68] sm:$0xff] %v403_v57  ;;  %v664_v6 = vmul.f32 %v2452_v48, %v403_v57  ;;  %v862_v36 = vpop.xlane.xlu0 %861 }
 0x237   :  { %681 = vadd.xlane.f32.xlu0 %v658_v9  ;;  %v404_v22 = vsub.f32 %v2692_v2, %v388_v0 }
 0x238   :  { %v405_v53 = vsub.f32 %v2693_v16, %v389_v21 }
 0x239   :  { %420 = vst [vmem:[#allocation2 + $0x70] sm:$0xff] %v404_v22  ;;  %v665_v13 = vmul.f32 %v2458_v29, %v404_v22 }
 0x23a   :  { %421 = vst [vmem:[#allocation2 + $0x78] sm:$0xff] %v405_v53  ;;  %v666_v18 = vmul.f32 %v2464_v32, %v405_v53  ;;  %v864_v30 = vpop.xlane.xlu0 %863 }
 0x23b   :  { %677 = vadd.xlane.f32.xlu0 %v656_v14 }
 0x23e   :  { %v866_v60 = vpop.xlane.xlu0 %865 }
 0x23f   :  { %687 = vadd.xlane.f32.xlu0 %v661_v52 }
 0x242   :  { %v868_v39 = vpop.xlane.xlu0 %867 }
 0x243   :  { %683 = vadd.xlane.f32.xlu0 %v659_v19 }
 0x247   :  { %689 = vadd.xlane.f32.xlu0 %v662_v3 }
 0x24b   :  { %685 = vadd.xlane.f32.xlu0 %v660_v26 }
 0x24f   :  { %695 = vadd.xlane.f32.xlu0 %v665_v13 }
 0x253   :  { %691 = vadd.xlane.f32.xlu0 %v663_v43 }
 0x257   :  { %693 = vadd.xlane.f32.xlu0 %v664_v6 }
 0x259   :  { %v860_v63 = vpop.xlane.xlu1 %859 }
 0x25a   :  { %v887_v41 = vadd.f32 %v860_v63, %v858_v47 }
 0x25b   :  { %697 = vadd.xlane.f32.xlu0 %v666_v18 }
 0x25c   :  { %v888_v40 = vadd.f32 %v887_v41, %v862_v36 }
 0x25d   :  { %v870_v10 = vpop.xlane.xlu1 %869 }
 0x25e   :  { %v889_v28 = vadd.f32 %v888_v40, %v864_v30 }
 0x25f   :  { %908 = vadd.xlane.f32.xlu0 %v907_v20 }
 0x260   :  { %v890_v4 = vadd.f32 %v889_v28, %v866_v60 }
 0x261   :  { %v872_v48 = vpop.xlane.xlu1 %871 }
 0x262   :  { %v891_v37 = vadd.f32 %v890_v4, %v868_v39 }
 0x264   :  { %v892_v51 = vadd.f32 %v891_v37, %v870_v10 }
 0x265   :  { %v874_v59 = vpop.xlane.xlu1 %873 }
 0x266   :  { %v893_v34 = vadd.f32 %v892_v51, %v872_v48 }
 0x268   :  { %v894_v42 = vadd.f32 %v893_v34, %v874_v59 }
 0x269   :  { %v876_v23 = vpop.xlane.xlu1 %875 }
 0x26a   :  { %v895_v0 = vadd.f32 %v894_v42, %v876_v23 }
 0x26d   :  { %v878_v50 = vpop.xlane.xlu1 %877 }
 0x26e   :  { %v896_v21 = vadd.f32 %v895_v0, %v878_v50 }
 0x271   :  { %v880_v54 = vpop.xlane.xlu1 %879 }
 0x272   :  { %v897_v22 = vadd.f32 %v896_v21, %v880_v54 }
 0x275   :  { %v882_v46 = vpop.xlane.xlu1 %881 }
 0x276   :  { %v898_v14 = vadd.f32 %v897_v22, %v882_v46 }
 0x279   :  { %v884_v9 = vpop.xlane.xlu1 %883 }
 0x27a   :  { %v899_v3 = vadd.f32 %v898_v14, %v884_v9 }
 0x27d   :  { %v886_v19 = vpop.xlane.xlu1 %885 }
 0x27e   :  { %v900_v43 = vadd.f32 %v899_v3, %v886_v19 }
 0x2a8   :  { %v672_v29 = vpop.xlane.xlu0 %671 }
 0x2ac   :  { %v668_v17 = vpop.xlane.xlu0 %667 }
 0x2b0   :  { %v674_v25 = vpop.xlane.xlu0 %673 }
 0x2b4   :  { %v670_v44 = vpop.xlane.xlu0 %669 }
 0x2b5   :  { %v699_v35 = vadd.f32 %v670_v44, %v668_v17 }
 0x2b6   :  { %v1038_v36 = vpop.xlane.xlu1 %1037 }
 0x2b7   :  { %v700_v1 = vadd.f32 %v699_v35, %v672_v29 }
 0x2b8   :  { %v680_v24 = vpop.xlane.xlu0 %679 }
 0x2b9   :  { %v701_v15 = vadd.f32 %v700_v1, %v674_v25 }
 0x2bc   :  { %v676_v32 = vpop.xlane.xlu0 %675 }
 0x2bd   :  { %v702_v7 = vadd.f32 %v701_v15, %v676_v32 }
 0x2c0   :  { %v682_v8 = vpop.xlane.xlu0 %681 }
 0x2c4   :  { %v678_v12 = vpop.xlane.xlu0 %677 }
 0x2c5   :  { %v703_v5 = vadd.f32 %v702_v7, %v678_v12 }
 0x2c7   :  { %v704_v56 = vadd.f32 %v703_v5, %v680_v24 }
 0x2c8   :  { %v688_v49 = vpop.xlane.xlu0 %687 }
 0x2c9   :  { %v705_v27 = vadd.f32 %v704_v56, %v682_v8 }
 0x2cc   :  { %v684_v33 = vpop.xlane.xlu0 %683 }
 0x2cd   :  { %v706_v11 = vadd.f32 %v705_v27, %v684_v33 }
 0x2d0   :  { %v690_v62 = vpop.xlane.xlu0 %689 }
 0x2d4   :  { %v686_v61 = vpop.xlane.xlu0 %685 }
 0x2d5   :  { %v707_v38 = vadd.f32 %v706_v11, %v686_v61 }
 0x2d7   :  { %v708_v55 = vadd.f32 %v707_v38, %v688_v49 }
 0x2d8   :  { %v696_v57 = vpop.xlane.xlu0 %695 }
 0x2d9   :  { %v709_v2 = vadd.f32 %v708_v55, %v690_v62 }
 0x2dc   :  { %v692_v31 = vpop.xlane.xlu0 %691 }
 0x2dd   :  { %v710_v16 = vadd.f32 %v709_v2, %v692_v31 }
 0x2e0   :  { %v694_v53 = vpop.xlane.xlu0 %693 }
 0x2e1   :  { %v711_v52 = vadd.f32 %v710_v16, %v694_v53 }
 0x2e3   :  { %v712_v26 = vadd.f32 %v711_v52, %v696_v57 }
 0x2e4   :  { %v698_v13 = vpop.xlane.xlu0 %697 }
 0x2e5   :  { %v713_v6 = vadd.f32 %v712_v26, %v698_v13 }
 0x2e7   :  { %v1039_v18 = vadd.f32 %v900_v43, %v713_v6 }
 0x2e8   :  { %v909_v20 = vpop.xlane.xlu0 %908 }
 0x2e9   :  { %v1040_v47 = vadd.f32 %v1039_v18, %v909_v20 }
 0x2eb   :  { %v2543_v30 = vadd.f32 %v1040_v47, %v1038_v36 }
 0x2ec LB: > { %v1677_v60 = vmov 0.0   ;;  %1122 = vmax.xlane.f32.xlu0 %v1665_v58  ;;  %v2694_v39 = vld [vmem:[#allocation26_spill] sm:$0xff]  ;;  %v2695_v29 = vld [vmem:[#allocation25_spill] sm:$0xff]  ;;  %v2696_v63 = vld [vmem:[#allocation24_spill] sm:$0xff]  ;;  %vm1678_vm4 = vmmov 0   ;;  %v1679_v1 = vmov 0   ;;  %v1202_v23 = vstv %s1669_s7  ;;  %s1669_s7 = sphi %s2548_s7, %s1117_s7   ;;  %v1665_v58 = vphi %v2489_v58, %v2712_v58  }
 0x2ed   : > { %1415 = vmatprep.subr.mxu0 %v1677_v60  ;;  %v2697_v17 = vld [vmem:[#allocation23_spill] sm:$0xff]  ;;  %v2698_v25 = vld [vmem:[#allocation22_spill] sm:$0xff]  ;;  %v2699_v10 = vld [vmem:[#allocation21_spill] sm:$0xff]  ;;  %1447 = vmatprep.mubr.msk.f32.mxu0 %vm1678_vm4, %v1677_v60  ;;  %s1319_s30 = sshll.u32 %s1669_s7, 3  ;;  %s1117_s7 = sadd.s32 1, %s1669_s7  }
 0x2ee   : > { %1416 = vmatpush3.msra.mxu0 %v2694_v39  ;;  %v2700_v44 = vld [vmem:[#allocation20_spill] sm:$0xff]  ;;  %v2701_v48 = vld [vmem:[#allocation19_spill] sm:$0xff]  ;;  %v2702_v24 = vld [vmem:[#allocation18_spill] sm:$0xff]  ;;  %1602 = vset.pattern.permute.xlu0 %v1679_v1  ;;  %s1120_s9 = scalar_lea.vmem [#allocation2], %s1319_s30  ;;  %p1114_p5 = scmp.ge.s32.totalorder %s1117_s7, 16  }
 0x2ef   : > { %1417 = vmatprep.subr.mxu0 %v1677_v60  ;;  %v2703_v41 = vld [vmem:[#allocation17_spill] sm:$0xff]  ;;  %v2704_v32 = vld [vmem:[#allocation16_spill] sm:$0xff]  ;;  %v2705_v35 = vld [vmem:[#allocation15_spill] sm:$0xff]  ;;  %s1680_s10 = smov (%p1114_p5), [#allocation6]  }
 0x2f0   : > { %1418 = vmatpush3.msra.mxu0 %v2695_v29  ;;  %v2706_v59 = vld [vmem:[#allocation14_spill] sm:$0xff]  ;;  %v2707_v40 = vld [vmem:[#allocation13_spill] sm:$0xff]  ;;  %v2708_v8 = vld [vmem:[#allocation12_spill] sm:$0xff]  ;;  %s1229_s11 = sshll.u32 (%p1114_p5), %s1680_s10, 4  ;;  %s1230_s11 = int_to_ptr.vmem [resolvable:$true] %s1229_s11 }
 0x2f1   : > { %1419 = vmatprep.subr.mxu0 %v1677_v60  ;;  %v2709_v28 = vld [vmem:[#allocation11_spill] sm:$0xff]  ;;  %v2710_v12 = vld [vmem:[#allocation9_spill] sm:$0xff]  ;;  %v1121_v62 = vld [vmem:[%s1120_s9] sm:$0xff]  ;;  %s1631_s12 = scalar_lea.vmem (%p1114_p5), %s1230_s11, 128  ;;  %p1636_p7 = scmp.lt.s32.totalorder (%p1114_p5), %s1230_s11, %s1230_s11 }
 0x2f2   : > { %1420 = vmatpush3.msra.mxu0 %v2696_v63  ;;  %vm1203_vm5 = vcmp.lt.s32.totalorder %v1202_v23, %v2710_v12  ;;  %v2711_v27 = vld [vmem:[#allocation10_spill] sm:$0xff]  ;;  %p1632_p6 = scmp.ne.s32.totalorder (%p1114_p5), %s1230_s11, %s1631_s12  ;;  %p1637_p8 = scmp.lt.s32.totalorder (%p1114_p5), %s1631_s12, %s1631_s12 }
 0x2f3   : > { %1421 = vmatprep.subr.mxu0 %v1677_v60  ;;  %v1204_v15 = vsel %vm1203_vm5, 1, %v1679_v1 }
 0x2f4   : > { %1422 = vmatpush3.msra.mxu0 %v2697_v17  ;;  %p1638_p9 = por (%p1114_p5), %p1637_p8, %p1636_p7 }
 0x2f5   : > { %1423 = vmatprep.subr.mxu0 %v1677_v60 }
 0x2f6   : > { %1424 = vmatpush3.msra.mxu0 %v2698_v25  ;;  %p1639_p10 = pnand (%p1114_p5), %p1638_p9, %p1632_p6 }
 0x2f7   : > { %1425 = vmatprep.subr.mxu0 %v1677_v60 }
 0x2f8   : > { %1426 = vmatpush3.msra.mxu0 %v2699_v10 }
 0x2f9   : > { %1427 = vmatprep.subr.mxu0 %v1677_v60 }
 0x2fa   : > { %1428 = vmatpush3.msra.mxu0 %v2700_v44 }
 0x2fb   : > { %1429 = vmatprep.subr.mxu0 %v1677_v60 }
 0x2fc   : > { %1430 = vmatpush3.msra.mxu0 %v2701_v48 }
 0x2fd   : > { %1431 = vmatprep.subr.mxu0 %v1677_v60 }
 0x2fe   : > { %1432 = vmatpush3.msra.mxu0 %v2702_v24 }
 0x2ff   : > { %1433 = vmatprep.subr.mxu0 %v1677_v60 }
 0x300   : > { %1434 = vmatpush3.msra.mxu0 %v2703_v41 }
 0x301   : > { %1435 = vmatprep.subr.mxu0 %v1677_v60 }
 0x302   : > { %1436 = vmatpush3.msra.mxu0 %v2704_v32  ;;  %1206 = vperm.xlu0 %1602, %v1204_v15  }
 0x303   : > { %1437 = vmatprep.subr.mxu0 %v1677_v60 }
 0x304   : > { %1438 = vmatpush3.msra.mxu0 %v2705_v35 }
 0x305   : > { %1439 = vmatprep.subr.mxu0 %v1677_v60 }
 0x306   : > { %1440 = vmatpush3.msra.mxu0 %v2706_v59 }
 0x307   : > { %1441 = vmatprep.subr.mxu0 %v1677_v60 }
 0x308   : > { %1442 = vmatpush3.msra.mxu0 %v2707_v40 }
 0x309   : > { %1443 = vmatprep.subr.mxu0 %v1677_v60 }
 0x30a   : > { %1444 = vmatpush3.msra.mxu0 %v2708_v8 }
 0x30b   : > { %1445 = vmatprep.subr.mxu0 %v1677_v60 }
 0x30c   : > { %1446 = vmatpush3.msra.mxu0 %v2709_v28 }
 0x375   : > { %v1123_v4 = vpop.xlane.xlu0 %1122 }
 0x376   : > { %v1124_v7 = vsub.f32 %v1665_v58, %v1123_v4 }
 0x378   : > { %v1125_v49 = vmul.f32 1.442695, %v1124_v7 }
 0x37a   : > { %1603 = vpow2.f32 %v1125_v49 }
 0x37d   : > { %v1207_v54 = vpop.permute.xlu0 %1206 }
 0x37e   : > { %vm1208_vm3 = vcmp.eq.s32.totalorder %v1207_v54, 1 }
 0x387   : > { %v1604_v5 = vpop.eup %1603 }
 0x388   : > { %1448 = vmatmul.mubr.f32.vlgmr.msra.gmra.mxu0 %v1604_v5 }
 0x448   : > { %v1193_v50 = vpop.f32.mrf.mxu0 }
 0x449   : > { %1605 = vlog2.f32 %v1193_v50 }
 0x44a   : > { %v1449_v37 = vpop.f32.mrf.mxu0 }
 0x456   : > { %v1606_v33 = vpop.eup %1605 }
 0x457   : > { %v1198_v56 = vmul.f32 0.6931472, %v1606_v33 }
 0x459   : > { %v1199_v51 = vadd.f32 %v1198_v56, %v1123_v4 }
 0x45b   : > { %v1200_v34 = vadd.f32 %v1199_v51, %v2711_v27 }
 0x45c   :  { %1116 = sbr.rel (!%p1114_p5) target bundleno = 748 (0x2ec), region = 64 }
 0x45d   : > { %v1201_v11 = vadd.f32 %v1200_v34, %v1121_v62 }
 0x45f   : > { %v1209_v61 = vsel %vm1208_vm3, %v1201_v11, %v1665_v58  }
 0x460   : > { %v2712_v58 = vmov %v1209_v61  ;;  %v1210_v38 = vadd.f32 (%p1114_p5), %v2505_v45, %v1209_v61 }
 0x462   :  { %1211 = vmax.xlane.f32.xlu0 %v1210_v38 }
 0x4eb   :  { %v1212_v46 = vpop.xlane.xlu0 %1211 }
 0x4ec   :  { %v1213_v42 = vsub.f32 %v1210_v38, %v1212_v46 }
 0x4ee   :  { %v1214_v57 = vmul.f32 1.442695, %v1213_v42 }
 0x4f0   :  { %1607 = vpow2.f32 %v1214_v57 }
 0x4fd   :  { %v1608_v55 = vpop.eup %1607 }
 0x4fe   :  { %1216 = vadd.xlane.f32.xlu0 %v1608_v55 }
 0x587   :  { %v1217_v0 = vpop.xlane.xlu0 %1216 }
 0x588   :  { %1609 = vlog2.f32 %v1217_v0 }
 0x595   :  { %v1610_v58 = vpop.eup %1609 }
 0x596   :  { %v1219_v9 = vmul.f32 0.6931472, %v1610_v58 }
 0x598   :  { %v1220_v31 = vadd.f32 %v1219_v9, %v1212_v46 }
 0x59a   :  { %v1221_v21 = vsub.f32 %v1220_v31, %v2543_v30 }
 0x59c   :  { %1222 = vst [vmem:[#allocation6] sm:$0xff] %v1221_v21 }
 0x59d   :  { %1642 = shalt.err (!%p1639_p10)
}
 0x59e   :  { %1232 = dma.vmem_to_hbm [thread:$0]  %s1230_s11, 128, %s2597_s8, [#allocation5]  }
 0x59f   :  { %1661 = dma.done.wait [#allocation5], 128  }
 0x5a0   :  { %1662 = vsyncadd [#allocation5], 4294967168 }
 0x5a1   :  { %1236 = vsyncpa [#allocation4], 1 }
 0x5a2   :  { %1237 = vsyncpa [#allocation5], 1 }

</bundles_post_ra>
